<compile_context>
chip_gen: v6e
topology: v6e:2x2x1
jax: 0.10.0
libtpu: 0.0.40
codegen_flags: <defaults>
</compile_context>

<pallas_src>
import functools

import numpy as np
import jax
import jax.numpy as jnp
from jax.experimental import pallas as pl
from jax.experimental.pallas import tpu as pltpu


def _round_up(x, m):
    return (x + m - 1) // m * m


# ----------------------------- Pallas kernel --------------------------------


def _shift_lanes(a, n):
    """out[:, i] = a[:, i - n] for i >= n, else 0 (static lane shift)."""
    if n == 0:
        return a
    pad = jnp.zeros((a.shape[0], n), a.dtype)
    return jnp.concatenate([pad, a[:, : a.shape[1] - n]], axis=1)


def temporal_attention_kernel(x_ref, wall_ref, red_ref, expd_ref, wout_ref,
                              bias_ref, mask_ref, o_ref, *,
                              num_heads, seq_len, channels, compute_dtype):
    """One grid step processes a (Bt, F*C) lane-dense tile of spatial rows."""
    F = seq_len
    C = channels
    H = num_heads
    D = C // H
    HFD = H * F * D           # q/k/v lane width, lane = h*F*D + t*D + d
    HFF = H * F * F           # logits lane width, lane = delta*H*F + h*F + t
    cdt = compute_dtype

    x = x_ref[...]                                            # (Bt, F*C) f32
    xc = x.astype(cdt)

    # ---- fused projection: q (scaled), k, v and rel-pos-K bias (one matmul)
    qkvs = jnp.dot(xc, wall_ref[...],
                   preferred_element_type=jnp.float32)        # (Bt, 3*HFD+HFF)
    q = qkvs[:, 0 * HFD:1 * HFD].astype(cdt)                  # (Bt, HFD)
    k = qkvs[:, 1 * HFD:2 * HFD].astype(cdt)                  # (Bt, HFD)
    v = qkvs[:, 2 * HFD:3 * HFD]                              # (Bt, HFD) f32
    sim_bias = qkvs[:, 3 * HFD:]                              # (Bt, HFF) f32

    # ---- q.k for every causal offset delta = t - s, as lane-dense products;
    # the 0/1 reduce matrix sums over d and packs logits to (delta, h, t).
    prods = [q * _shift_lanes(k, dlt * D) for dlt in range(F)]
    prod_all = jnp.concatenate(prods, axis=1)                 # (Bt, F*HFD)
    sim = jnp.dot(prod_all, red_ref[...],
                  preferred_element_type=jnp.float32)         # (Bt, HFF)
    sim = sim + sim_bias + mask_ref[...]                      # -1e16 where s<0

    # ---- softmax over delta: the 8 lanes of one group are {base + j*H*F},
    # so a cyclic roll tree (shift = H*F * 2^j) reduces AND re-broadcasts.
    stride = H * F
    m = sim
    s = stride
    while s < F * stride:
        m = jnp.maximum(m, pltpu.roll(m, shift=s, axis=1))
        s *= 2
    p = jnp.exp(sim - m)
    l = p
    s = stride
    while s < F * stride:
        l = l + pltpu.roll(l, shift=s, axis=1)
        s *= 2
    attn = p * pl.reciprocal(l, approx=True)                  # (Bt, HFF) f32
    attn_c = attn.astype(cdt)

    # ---- attn.v: broadcast attn over d with a 0/1 matmul, then accumulate
    # the lane-aligned products against the shifted v slabs (f32 accumulate).
    a_exp = jnp.dot(attn_c, expd_ref[...],
                    preferred_element_type=jnp.float32)       # (Bt, F*HFD)
    out_heads = a_exp[:, 0:HFD] * v
    for dlt in range(1, F):
        out_heads = out_heads + (a_exp[:, dlt * HFD:(dlt + 1) * HFD]
                                 * _shift_lanes(v, dlt * D))

    # ---- fused output projection + rel-pos-V branch; bias + residual; store
    lhs = jnp.concatenate([out_heads.astype(cdt), attn_c], axis=1)
    out = jnp.dot(lhs, wout_ref[...],
                  preferred_element_type=jnp.float32)         # (Bt, F*C)
    o_ref[...] = (out + bias_ref[...] + x).astype(o_ref.dtype)


def temporal_attention_pallas(x_wide, folded, *, num_heads, seq_len, channels,
                              block_rows=512, compute_dtype=jnp.bfloat16,
                              vmem_limit_bytes=48 * 1024 * 1024):
    """x_wide: (B, F*C) float32, lane-dense.  Returns (B, F*C) float32.

    block_rows=512 keeps the per-tile VMEM footprint well under the v7x
    64 MiB budget; on v6e/v5e it can be raised (with vmem_limit_bytes) for
    large B to amortize per-grid-step overhead.
    """
    B, FC = x_wide.shape
    F, C, H = seq_len, channels, num_heads
    D = C // H
    assert FC == F * C
    w_all, red, expd, w_out, bias_row, mask_row = folded

    # tile rows: multiple of 8 sublanes; keep >=2 grid steps when possible so
    # both v7x TensorCores get work.
    bm = max(8, min(_round_up(block_rows, 8), _round_up(B, 8)))
    Bp = _round_up(B, bm)
    if Bp // bm < 2 and Bp > 8:
        bm = _round_up((Bp + 1) // 2, 8)
        Bp = _round_up(B, bm)
    if Bp != B:
        x_wide = jnp.pad(x_wide, ((0, Bp - B), (0, 0)))

    kernel = functools.partial(
        temporal_attention_kernel, num_heads=H, seq_len=F, channels=C,
        compute_dtype=compute_dtype)

    HFD = H * F * D
    HFF = H * F * F
    out = pl.pallas_call(
        kernel,
        out_shape=jax.ShapeDtypeStruct((Bp, FC), x_wide.dtype),
        grid=(Bp // bm,),
        in_specs=[
            pl.BlockSpec((bm, FC), lambda i: (i, 0)),             # x tile
            pl.BlockSpec((FC, 3 * HFD + HFF), lambda i: (0, 0)),  # fused W
            pl.BlockSpec((F * HFD, HFF), lambda i: (0, 0)),       # reduce 0/1
            pl.BlockSpec((HFF, F * HFD), lambda i: (0, 0)),       # expand 0/1
            pl.BlockSpec((HFD + HFF, FC), lambda i: (0, 0)),      # Wo + relV
            pl.BlockSpec((1, FC), lambda i: (0, 0)),              # bias row
            pl.BlockSpec((1, HFF), lambda i: (0, 0)),             # causal mask
        ],
        out_specs=pl.BlockSpec((bm, FC), lambda i: (i, 0)),
        compiler_params=pltpu.CompilerParams(
            dimension_semantics=("parallel",),
            vmem_limit_bytes=vmem_limit_bytes),
    )(x_wide, w_all, red, expd, w_out, bias_row, mask_row)
    return out[:B]


# --------------------------- weight folding (host) ---------------------------


def _relative_position_embeddings(table, length_q, length_k, max_rel):
    """Mirrors RelativePosition.forward: gather (Lq, Lk, D) from the table."""
    rq = np.arange(length_q)
    rk = np.arange(length_k)
    dist = rk[None, :] - rq[:, None]
    final = np.clip(dist, -max_rel, max_rel) + max_rel
    return table[final]


def fold_temporal_attention_weights(params, *, channels, num_heads,
                                    temporal_length,
                                    compute_dtype=jnp.bfloat16):
    """Precompute the lane-dense fused weights / 0-1 matrices for the kernel."""
    wq, wk, wv, wo, bo, tab_k, tab_v = [np.asarray(p, np.float32)
                                        for p in params]
    C, H, F = channels, num_heads, temporal_length
    assert C % H == 0
    D = C // H
    scale = D ** (-0.5)
    assert F & (F - 1) == 0, "temporal_length must be a power of two"

    k2 = _relative_position_embeddings(tab_k, F, F, F)        # (F, F, D)
    v2 = _relative_position_embeddings(tab_v, F, F, F)

    HFD, HFF, FC = H * F * D, H * F * F, F * C

    def qkv_lane(h, t):
        return h * F * D + t * D

    def sim_lane(dlt, h, t):
        return dlt * H * F + h * F + t

    # block-diagonal projections: x_wide (.., (t,c)) -> q/k/v (.., (h,t,d)),
    # softmax scale folded into the q columns; rel-pos-K bias folded via Wq.
    wq_blk = np.zeros((FC, HFD), np.float32)
    wk_blk = np.zeros((FC, HFD), np.float32)
    wv_blk = np.zeros((FC, HFD), np.float32)
    wbias = np.zeros((FC, HFF), np.float32)
    for t in range(F):
        rows = slice(t * C, (t + 1) * C)
        for h in range(H):
            cols = slice(qkv_lane(h, t), qkv_lane(h, t) + D)
            wq_blk[rows, cols] = scale * wq[:, h * D:(h + 1) * D]
            wk_blk[rows, cols] = wk[:, h * D:(h + 1) * D]
            wv_blk[rows, cols] = wv[:, h * D:(h + 1) * D]
            for dlt in range(t + 1):                  # causal offsets only
                wbias[rows, sim_lane(dlt, h, t)] = (
                    scale * (wq[:, h * D:(h + 1) * D] @ k2[t, t - dlt]))
    w_all = np.concatenate([wq_blk, wk_blk, wv_blk, wbias], axis=1)

    # 0/1 matrices: sum-over-d reduce (product lanes -> logit lanes) and
    # broadcast-over-d expand (attn lanes -> qkv lanes), per causal offset.
    red = np.zeros((F * HFD, HFF), np.float32)
    expd = np.zeros((HFF, F * HFD), np.float32)
    for dlt in range(F):
        for h in range(H):
            for t in range(F):
                col = sim_lane(dlt, h, t)
                lo = dlt * HFD + qkv_lane(h, t)
                if t >= dlt:
                    red[lo:lo + D, col] = 1.0
                expd[col, lo:lo + D] = 1.0

    # output projection (block-diag over t) + rel-pos-V branch folded via Wo.
    wo_blk = np.zeros((HFD, FC), np.float32)
    mv2 = np.zeros((HFF, FC), np.float32)
    for t in range(F):
        cols = slice(t * C, (t + 1) * C)
        for h in range(H):
            wo_blk[qkv_lane(h, t):qkv_lane(h, t) + D, cols] = (
                wo[h * D:(h + 1) * D, :])
            for dlt in range(t + 1):
                mv2[sim_lane(dlt, h, t), cols] = (
                    v2[t, t - dlt] @ wo[h * D:(h + 1) * D, :])
    w_out = np.concatenate([wo_blk, mv2], axis=0)

    bias_row = np.tile(bo, F)[None, :]                        # (1, F*C)
    mask_row = np.zeros((1, HFF), np.float32)                 # -1e16 where s<0
    for dlt in range(F):
        for h in range(H):
            for t in range(dlt):
                mask_row[0, sim_lane(dlt, h, t)] = -1e16

    cdt = compute_dtype
    return (jnp.asarray(w_all, cdt), jnp.asarray(red, cdt),
            jnp.asarray(expd, cdt), jnp.asarray(w_out, cdt),
            jnp.asarray(bias_row, jnp.float32),
            jnp.asarray(mask_row, jnp.float32))


# ------------------------------ module forward --------------------------------


def temporal_attention_forward(x, *, channels, num_heads, temporal_length,
                               params, block_rows=512,
                               compute_dtype=jnp.bfloat16):
    """Full module forward (dims=2 path, with_norm=False).  x: (b*f,c,H,W)."""
    bs, c, Hs, Ws = x.shape
    assert c == channels
    f = temporal_length
    b = bs // f

    folded = fold_temporal_attention_weights(
        params, channels=channels, num_heads=num_heads,
        temporal_length=temporal_length, compute_dtype=compute_dtype)

    # '(b f) c x y -> (b x y) (f c)'  (lane-dense kernel layout)
    x_wide = (x.reshape(b, f, c, Hs, Ws)
               .transpose(0, 3, 4, 1, 2)
               .reshape(b * Hs * Ws, f * c))

    out_wide = temporal_attention_pallas(
        x_wide, folded, num_heads=num_heads, seq_len=f, channels=c,
        block_rows=block_rows, compute_dtype=compute_dtype)

    # '(b x y) (f c) -> (b f) c x y'
    return (out_wide.reshape(b, Hs, Ws, f, c)
                    .transpose(0, 3, 4, 1, 2)
                    .reshape(b * f, c, Hs, Ws))


# ------------------------------ synthetic params ------------------------------


def make_params(key, channels, num_heads, temporal_length):
    """Deterministic synthetic parameters (shapes from __init__)."""
    d = channels // num_heads
    ks = jax.random.split(key, 7)
    s = 1.0 / jnp.sqrt(channels)
    # Linear weights stored as (in, out); applied as x @ W.
    wq = jax.random.uniform(ks[0], (channels, channels), jnp.float32, -s, s)
    wk = jax.random.uniform(ks[1], (channels, channels), jnp.float32, -s, s)
    wv = jax.random.uniform(ks[2], (channels, channels), jnp.float32, -s, s)
    wo = jax.random.uniform(ks[3], (channels, channels), jnp.float32, -s, s)
    bo = jax.random.uniform(ks[4], (channels,), jnp.float32, -s, s)
    lim = jnp.sqrt(6.0 / (2 * temporal_length + 1 + d))
    tab_k = jax.random.uniform(ks[5], (2 * temporal_length + 1, d),
                               jnp.float32, -lim, lim)
    tab_v = jax.random.uniform(ks[6], (2 * temporal_length + 1, d),
                               jnp.float32, -lim, lim)
    return wq, wk, wv, wo, bo, tab_k, tab_v


# ------------------------------ pure-JAX reference ---------------------------


def reference_forward(x, *, channels, num_heads, temporal_length, params):
    bs, c, Hs, Ws = x.shape
    f = temporal_length
    b = bs // f
    wq, wk, wv, wo, bo, tab_k, tab_v = params
    d = channels // num_heads
    scale = d ** (-0.5)

    xr = (x.reshape(b, f, c, Hs, Ws).transpose(0, 3, 4, 1, 2)
           .reshape(b * Hs * Ws, f, c))
    q = xr @ wq
    k = xr @ wk
    v = xr @ wv

    def split_heads(t):
        B, F, C = t.shape
        return t.reshape(B, F, num_heads, d).transpose(0, 2, 1, 3).reshape(
            B * num_heads, F, d)

    q, k, v = map(split_heads, (q, k, v))
    sim = jnp.einsum('bid,bjd->bij', q, k) * scale
    k2 = jnp.asarray(_relative_position_embeddings(
        np.asarray(tab_k), f, f, temporal_length))
    v2 = jnp.asarray(_relative_position_embeddings(
        np.asarray(tab_v), f, f, temporal_length))
    sim = sim + jnp.einsum('btd,tsd->bts', q, k2) * scale
    mask = jnp.tril(jnp.ones((f, f), jnp.float32))[None]
    sim = jnp.where(mask == 0, -1e16, sim)
    attn = jax.nn.softmax(sim, axis=-1)
    out = jnp.einsum('bij,bjd->bid', attn, v)
    out = out + jnp.einsum('bts,tsd->btd', attn, v2)
    Bh = out.shape[0]
    out = out.reshape(Bh // num_heads, num_heads, f, d).transpose(
        0, 2, 1, 3).reshape(Bh // num_heads, f, c)
    out = out @ wo + bo + xr
    return (out.reshape(b, Hs, Ws, f, c).transpose(0, 3, 4, 1, 2)
               .reshape(b * f, c, Hs, Ws))


# ---------------------------------- main -------------------------------------


if __name__ == "__main__":
    channels = 32
    num_heads = 2
    temporal_length = 8

    key = jax.random.PRNGKey(0)
    kx1, kx2, kp = jax.random.split(key, 3)
    params = make_params(kp, channels, num_heads, temporal_length)

    # bf16 MXU operands (review default) -> tolerances loosened accordingly.
    TOL = dict(atol=3e-2, rtol=3e-2)

    # ---- test 1: small case (grid auto-split into 2 steps) -------------------
    b, Hs, Ws = 2, 4, 4
    x1 = jax.random.normal(kx1, (b * temporal_length, channels, Hs, Ws),
                           jnp.float32)
    out1 = jax.block_until_ready(temporal_attention_forward(
        x1, channels=channels, num_heads=num_heads,
        temporal_length=temporal_length, params=params))
    ref1 = jax.block_until_ready(reference_forward(
        x1, channels=channels, num_heads=num_heads,
        temporal_length=temporal_length, params=params))
    assert out1.shape == x1.shape
    err1 = float(jnp.max(jnp.abs(out1 - ref1)))
    assert jnp.allclose(out1, ref1, **TOL), err1

    # ---- test 2: exercises row padding + multi-step grid ----------------------
    b, Hs, Ws = 2, 6, 6                # B = 72 rows, block_rows=32 -> pad to 96
    x2 = jax.random.normal(kx2, (b * temporal_length, channels, Hs, Ws),
                           jnp.float32)
    out2 = jax.block_until_ready(temporal_attention_forward(
        x2, channels=channels, num_heads=num_heads,
        temporal_length=temporal_length, params=params, block_rows=32))
    ref2 = jax.block_until_ready(reference_forward(
        x2, channels=channels, num_heads=num_heads,
        temporal_length=temporal_length, params=params))
    assert out2.shape == x2.shape
    err2 = float(jnp.max(jnp.abs(out2 - ref2)))
    assert jnp.allclose(out2, ref2, **TOL), err2

    print("KERNEL_OK")
</pallas_src>

<mosaic_0001>
module attributes {stable_mosaic.version = 11 : i64} {
  func.func @temporal_attention_kernel(%arg0: i32, %arg1: memref<16x256xf32, #tpu.memory_space<vmem>>, %arg2: memref<256x896xbf16, #tpu.memory_space<vmem>>, %arg3: memref<2048x128xbf16, #tpu.memory_space<vmem>>, %arg4: memref<128x2048xbf16, #tpu.memory_space<vmem>>, %arg5: memref<384x256xbf16, #tpu.memory_space<vmem>>, %arg6: memref<1x256xf32, #tpu.memory_space<vmem>>, %arg7: memref<1x128xf32, #tpu.memory_space<vmem>>, %arg8: memref<16x256xf32, #tpu.memory_space<vmem>>) attributes {dimension_semantics = [#tpu.dimension_semantics<parallel>], iteration_bounds = array<i64: 2>, scalar_prefetch = 0 : i64, scratch_operands = 0 : i64, tpu.core_type = #tpu.core_type<tc>, window_params = [{transform_indices = @transform_0, window_bounds = array<i64: 16, 256>}, {pipeline_mode = #tpu.pipeline_mode<synchronous>, transform_indices = @transform_1, window_bounds = array<i64: 256, 896>}, {pipeline_mode = #tpu.pipeline_mode<synchronous>, transform_indices = @transform_2, window_bounds = array<i64: 2048, 128>}, {pipeline_mode = #tpu.pipeline_mode<synchronous>, transform_indices = @transform_3, window_bounds = array<i64: 128, 2048>}, {pipeline_mode = #tpu.pipeline_mode<synchronous>, transform_indices = @transform_4, window_bounds = array<i64: 384, 256>}, {pipeline_mode = #tpu.pipeline_mode<synchronous>, transform_indices = @transform_5, window_bounds = array<i64: 1, 256>}, {pipeline_mode = #tpu.pipeline_mode<synchronous>, transform_indices = @transform_6, window_bounds = array<i64: 1, 128>}, {transform_indices = @transform_7, window_bounds = array<i64: 16, 256>}]} {
    %c0 = arith.constant 0 : index
    %c0_0 = arith.constant 0 : index
    %0 = vector.load %arg1[%c0, %c0_0] : memref<16x256xf32, #tpu.memory_space<vmem>>, vector<16x256xf32>
    %1 = arith.truncf %0 : vector<16x256xf32> to vector<16x256xbf16>
    %c0_1 = arith.constant 0 : index
    %c0_2 = arith.constant 0 : index
    %2 = vector.load %arg2[%c0_1, %c0_2] : memref<256x896xbf16, #tpu.memory_space<vmem>>, vector<256x896xbf16>
    %cst = arith.constant dense<0.000000e+00> : vector<16x896xf32>
    %3 = tpu.matmul %1, %2, %cst {dimension_numbers = #tpu.dot_dimension_numbers<[1], [0], [0], [1], [0, 0, 1, 1], [], []>} : vector<16x256xbf16>, vector<256x896xbf16>, vector<16x896xf32> -> vector<16x896xf32>
    %4 = vector.extract_strided_slice %3 {offsets = [0, 0], sizes = [16, 256], strides = [1, 1]} : vector<16x896xf32> to vector<16x256xf32>
    %5 = arith.truncf %4 : vector<16x256xf32> to vector<16x256xbf16>
    %6 = vector.extract_strided_slice %3 {offsets = [0, 256], sizes = [16, 256], strides = [1, 1]} : vector<16x896xf32> to vector<16x256xf32>
    %7 = arith.truncf %6 : vector<16x256xf32> to vector<16x256xbf16>
    %8 = vector.extract_strided_slice %3 {offsets = [0, 512], sizes = [16, 256], strides = [1, 1]} : vector<16x896xf32> to vector<16x256xf32>
    %9 = vector.extract_strided_slice %3 {offsets = [0, 768], sizes = [16, 128], strides = [1, 1]} : vector<16x896xf32> to vector<16x128xf32>
    %10 = arith.mulf %5, %7 : vector<16x256xbf16>
    %cst_3 = arith.constant 0.000000e+00 : bf16
    %11 = vector.broadcast %cst_3 : bf16 to vector<16x16xbf16>
    %12 = vector.extract_strided_slice %7 {offsets = [0, 0], sizes = [16, 240], strides = [1, 1]} : vector<16x256xbf16> to vector<16x240xbf16>
    %13 = tpu.concatenate %11, %12 in 1 : vector<16x16xbf16>, vector<16x240xbf16> -> vector<16x256xbf16>
    %14 = arith.mulf %5, %13 : vector<16x256xbf16>
    %cst_4 = arith.constant 0.000000e+00 : bf16
    %15 = vector.broadcast %cst_4 : bf16 to vector<16x32xbf16>
    %16 = vector.extract_strided_slice %7 {offsets = [0, 0], sizes = [16, 224], strides = [1, 1]} : vector<16x256xbf16> to vector<16x224xbf16>
    %17 = tpu.concatenate %15, %16 in 1 : vector<16x32xbf16>, vector<16x224xbf16> -> vector<16x256xbf16>
    %18 = arith.mulf %5, %17 : vector<16x256xbf16>
    %cst_5 = arith.constant 0.000000e+00 : bf16
    %19 = vector.broadcast %cst_5 : bf16 to vector<16x48xbf16>
    %20 = vector.extract_strided_slice %7 {offsets = [0, 0], sizes = [16, 208], strides = [1, 1]} : vector<16x256xbf16> to vector<16x208xbf16>
    %21 = tpu.concatenate %19, %20 in 1 : vector<16x48xbf16>, vector<16x208xbf16> -> vector<16x256xbf16>
    %22 = arith.mulf %5, %21 : vector<16x256xbf16>
    %cst_6 = arith.constant 0.000000e+00 : bf16
    %23 = vector.broadcast %cst_6 : bf16 to vector<16x64xbf16>
    %24 = vector.extract_strided_slice %7 {offsets = [0, 0], sizes = [16, 192], strides = [1, 1]} : vector<16x256xbf16> to vector<16x192xbf16>
    %25 = tpu.concatenate %23, %24 in 1 : vector<16x64xbf16>, vector<16x192xbf16> -> vector<16x256xbf16>
    %26 = arith.mulf %5, %25 : vector<16x256xbf16>
    %cst_7 = arith.constant 0.000000e+00 : bf16
    %27 = vector.broadcast %cst_7 : bf16 to vector<16x80xbf16>
    %28 = vector.extract_strided_slice %7 {offsets = [0, 0], sizes = [16, 176], strides = [1, 1]} : vector<16x256xbf16> to vector<16x176xbf16>
    %29 = tpu.concatenate %27, %28 in 1 : vector<16x80xbf16>, vector<16x176xbf16> -> vector<16x256xbf16>
    %30 = arith.mulf %5, %29 : vector<16x256xbf16>
    %cst_8 = arith.constant 0.000000e+00 : bf16
    %31 = vector.broadcast %cst_8 : bf16 to vector<16x96xbf16>
    %32 = vector.extract_strided_slice %7 {offsets = [0, 0], sizes = [16, 160], strides = [1, 1]} : vector<16x256xbf16> to vector<16x160xbf16>
    %33 = tpu.concatenate %31, %32 in 1 : vector<16x96xbf16>, vector<16x160xbf16> -> vector<16x256xbf16>
    %34 = arith.mulf %5, %33 : vector<16x256xbf16>
    %cst_9 = arith.constant 0.000000e+00 : bf16
    %35 = vector.broadcast %cst_9 : bf16 to vector<16x112xbf16>
    %36 = vector.extract_strided_slice %7 {offsets = [0, 0], sizes = [16, 144], strides = [1, 1]} : vector<16x256xbf16> to vector<16x144xbf16>
    %37 = tpu.concatenate %35, %36 in 1 : vector<16x112xbf16>, vector<16x144xbf16> -> vector<16x256xbf16>
    %38 = arith.mulf %5, %37 : vector<16x256xbf16>
    %39 = tpu.concatenate %10, %14, %18, %22, %26, %30, %34, %38 in 1 : vector<16x256xbf16>, vector<16x256xbf16>, vector<16x256xbf16>, vector<16x256xbf16>, vector<16x256xbf16>, vector<16x256xbf16>, vector<16x256xbf16>, vector<16x256xbf16> -> vector<16x2048xbf16>
    %c0_10 = arith.constant 0 : index
    %c0_11 = arith.constant 0 : index
    %40 = vector.load %arg3[%c0_10, %c0_11] : memref<2048x128xbf16, #tpu.memory_space<vmem>>, vector<2048x128xbf16>
    %cst_12 = arith.constant dense<0.000000e+00> : vector<16x128xf32>
    %41 = tpu.matmul %39, %40, %cst_12 {dimension_numbers = #tpu.dot_dimension_numbers<[1], [0], [0], [1], [0, 0, 1, 1], [], []>} : vector<16x2048xbf16>, vector<2048x128xbf16>, vector<16x128xf32> -> vector<16x128xf32>
    %42 = arith.addf %41, %9 : vector<16x128xf32>
    %c0_13 = arith.constant 0 : index
    %c0_14 = arith.constant 0 : index
    %43 = vector.load %arg7[%c0_13, %c0_14] : memref<1x128xf32, #tpu.memory_space<vmem>>, vector<1x128xf32>
    %44 = vector.broadcast %43 : vector<1x128xf32> to vector<16x128xf32>
    %45 = arith.addf %42, %44 : vector<16x128xf32>
    %c16_i32 = arith.constant 16 : i32
    %46 = tpu.dynamic_rotate %45 by %c16_i32 dim 1 : vector<16x128xf32>, i32 -> vector<16x128xf32>
    %47 = arith.maximumf %45, %46 : vector<16x128xf32>
    %c32_i32 = arith.constant 32 : i32
    %48 = tpu.dynamic_rotate %47 by %c32_i32 dim 1 : vector<16x128xf32>, i32 -> vector<16x128xf32>
    %49 = arith.maximumf %47, %48 : vector<16x128xf32>
    %c64_i32 = arith.constant 64 : i32
    %50 = tpu.dynamic_rotate %49 by %c64_i32 dim 1 : vector<16x128xf32>, i32 -> vector<16x128xf32>
    %51 = arith.maximumf %49, %50 : vector<16x128xf32>
    %52 = arith.subf %45, %51 : vector<16x128xf32>
    %53 = math.exp %52 : vector<16x128xf32>
    %c16_i32_15 = arith.constant 16 : i32
    %54 = tpu.dynamic_rotate %53 by %c16_i32_15 dim 1 : vector<16x128xf32>, i32 -> vector<16x128xf32>
    %55 = arith.addf %53, %54 : vector<16x128xf32>
    %c32_i32_16 = arith.constant 32 : i32
    %56 = tpu.dynamic_rotate %55 by %c32_i32_16 dim 1 : vector<16x128xf32>, i32 -> vector<16x128xf32>
    %57 = arith.addf %55, %56 : vector<16x128xf32>
    %c64_i32_17 = arith.constant 64 : i32
    %58 = tpu.dynamic_rotate %57 by %c64_i32_17 dim 1 : vector<16x128xf32>, i32 -> vector<16x128xf32>
    %59 = arith.addf %57, %58 : vector<16x128xf32>
    %60 = tpu.reciprocal %59 {approx = true} : vector<16x128xf32> -> vector<16x128xf32>
    %61 = arith.mulf %53, %60 : vector<16x128xf32>
    %62 = arith.truncf %61 : vector<16x128xf32> to vector<16x128xbf16>
    %c0_18 = arith.constant 0 : index
    %c0_19 = arith.constant 0 : index
    %63 = vector.load %arg4[%c0_18, %c0_19] : memref<128x2048xbf16, #tpu.memory_space<vmem>>, vector<128x2048xbf16>
    %cst_20 = arith.constant dense<0.000000e+00> : vector<16x2048xf32>
    %64 = tpu.matmul %62, %63, %cst_20 {dimension_numbers = #tpu.dot_dimension_numbers<[1], [0], [0], [1], [0, 0, 1, 1], [], []>} : vector<16x128xbf16>, vector<128x2048xbf16>, vector<16x2048xf32> -> vector<16x2048xf32>
    %65 = vector.extract_strided_slice %64 {offsets = [0, 0], sizes = [16, 256], strides = [1, 1]} : vector<16x2048xf32> to vector<16x256xf32>
    %66 = arith.mulf %65, %8 : vector<16x256xf32>
    %67 = vector.extract_strided_slice %64 {offsets = [0, 256], sizes = [16, 256], strides = [1, 1]} : vector<16x2048xf32> to vector<16x256xf32>
    %cst_21 = arith.constant 0.000000e+00 : f32
    %68 = vector.broadcast %cst_21 : f32 to vector<16x16xf32>
    %69 = vector.extract_strided_slice %8 {offsets = [0, 0], sizes = [16, 240], strides = [1, 1]} : vector<16x256xf32> to vector<16x240xf32>
    %70 = tpu.concatenate %68, %69 in 1 : vector<16x16xf32>, vector<16x240xf32> -> vector<16x256xf32>
    %71 = arith.mulf %67, %70 : vector<16x256xf32>
    %72 = arith.addf %66, %71 : vector<16x256xf32>
    %73 = vector.extract_strided_slice %64 {offsets = [0, 512], sizes = [16, 256], strides = [1, 1]} : vector<16x2048xf32> to vector<16x256xf32>
    %cst_22 = arith.constant 0.000000e+00 : f32
    %74 = vector.broadcast %cst_22 : f32 to vector<16x32xf32>
    %75 = vector.extract_strided_slice %8 {offsets = [0, 0], sizes = [16, 224], strides = [1, 1]} : vector<16x256xf32> to vector<16x224xf32>
    %76 = tpu.concatenate %74, %75 in 1 : vector<16x32xf32>, vector<16x224xf32> -> vector<16x256xf32>
    %77 = arith.mulf %73, %76 : vector<16x256xf32>
    %78 = arith.addf %72, %77 : vector<16x256xf32>
    %79 = vector.extract_strided_slice %64 {offsets = [0, 768], sizes = [16, 256], strides = [1, 1]} : vector<16x2048xf32> to vector<16x256xf32>
    %cst_23 = arith.constant 0.000000e+00 : f32
    %80 = vector.broadcast %cst_23 : f32 to vector<16x48xf32>
    %81 = vector.extract_strided_slice %8 {offsets = [0, 0], sizes = [16, 208], strides = [1, 1]} : vector<16x256xf32> to vector<16x208xf32>
    %82 = tpu.concatenate %80, %81 in 1 : vector<16x48xf32>, vector<16x208xf32> -> vector<16x256xf32>
    %83 = arith.mulf %79, %82 : vector<16x256xf32>
    %84 = arith.addf %78, %83 : vector<16x256xf32>
    %85 = vector.extract_strided_slice %64 {offsets = [0, 1024], sizes = [16, 256], strides = [1, 1]} : vector<16x2048xf32> to vector<16x256xf32>
    %cst_24 = arith.constant 0.000000e+00 : f32
    %86 = vector.broadcast %cst_24 : f32 to vector<16x64xf32>
    %87 = vector.extract_strided_slice %8 {offsets = [0, 0], sizes = [16, 192], strides = [1, 1]} : vector<16x256xf32> to vector<16x192xf32>
    %88 = tpu.concatenate %86, %87 in 1 : vector<16x64xf32>, vector<16x192xf32> -> vector<16x256xf32>
    %89 = arith.mulf %85, %88 : vector<16x256xf32>
    %90 = arith.addf %84, %89 : vector<16x256xf32>
    %91 = vector.extract_strided_slice %64 {offsets = [0, 1280], sizes = [16, 256], strides = [1, 1]} : vector<16x2048xf32> to vector<16x256xf32>
    %cst_25 = arith.constant 0.000000e+00 : f32
    %92 = vector.broadcast %cst_25 : f32 to vector<16x80xf32>
    %93 = vector.extract_strided_slice %8 {offsets = [0, 0], sizes = [16, 176], strides = [1, 1]} : vector<16x256xf32> to vector<16x176xf32>
    %94 = tpu.concatenate %92, %93 in 1 : vector<16x80xf32>, vector<16x176xf32> -> vector<16x256xf32>
    %95 = arith.mulf %91, %94 : vector<16x256xf32>
    %96 = arith.addf %90, %95 : vector<16x256xf32>
    %97 = vector.extract_strided_slice %64 {offsets = [0, 1536], sizes = [16, 256], strides = [1, 1]} : vector<16x2048xf32> to vector<16x256xf32>
    %cst_26 = arith.constant 0.000000e+00 : f32
    %98 = vector.broadcast %cst_26 : f32 to vector<16x96xf32>
    %99 = vector.extract_strided_slice %8 {offsets = [0, 0], sizes = [16, 160], strides = [1, 1]} : vector<16x256xf32> to vector<16x160xf32>
    %100 = tpu.concatenate %98, %99 in 1 : vector<16x96xf32>, vector<16x160xf32> -> vector<16x256xf32>
    %101 = arith.mulf %97, %100 : vector<16x256xf32>
    %102 = arith.addf %96, %101 : vector<16x256xf32>
    %103 = vector.extract_strided_slice %64 {offsets = [0, 1792], sizes = [16, 256], strides = [1, 1]} : vector<16x2048xf32> to vector<16x256xf32>
    %cst_27 = arith.constant 0.000000e+00 : f32
    %104 = vector.broadcast %cst_27 : f32 to vector<16x112xf32>
    %105 = vector.extract_strided_slice %8 {offsets = [0, 0], sizes = [16, 144], strides = [1, 1]} : vector<16x256xf32> to vector<16x144xf32>
    %106 = tpu.concatenate %104, %105 in 1 : vector<16x112xf32>, vector<16x144xf32> -> vector<16x256xf32>
    %107 = arith.mulf %103, %106 : vector<16x256xf32>
    %108 = arith.addf %102, %107 : vector<16x256xf32>
    %109 = arith.truncf %108 : vector<16x256xf32> to vector<16x256xbf16>
    %110 = tpu.concatenate %109, %62 in 1 : vector<16x256xbf16>, vector<16x128xbf16> -> vector<16x384xbf16>
    %c0_28 = arith.constant 0 : index
    %c0_29 = arith.constant 0 : index
    %111 = vector.load %arg5[%c0_28, %c0_29] : memref<384x256xbf16, #tpu.memory_space<vmem>>, vector<384x256xbf16>
    %cst_30 = arith.constant dense<0.000000e+00> : vector<16x256xf32>
    %112 = tpu.matmul %110, %111, %cst_30 {dimension_numbers = #tpu.dot_dimension_numbers<[1], [0], [0], [1], [0, 0, 1, 1], [], []>} : vector<16x384xbf16>, vector<384x256xbf16>, vector<16x256xf32> -> vector<16x256xf32>
    %c0_31 = arith.constant 0 : index
    %c0_32 = arith.constant 0 : index
    %113 = vector.load %arg6[%c0_31, %c0_32] : memref<1x256xf32, #tpu.memory_space<vmem>>, vector<1x256xf32>
    %114 = vector.broadcast %113 : vector<1x256xf32> to vector<16x256xf32>
    %115 = arith.addf %112, %114 : vector<16x256xf32>
    %116 = arith.addf %115, %0 : vector<16x256xf32>
    %c0_33 = arith.constant 0 : index
    %c0_34 = arith.constant 0 : index
    %117 = vector.load %arg8[%c0_33, %c0_34] : memref<16x256xf32, #tpu.memory_space<vmem>>, vector<16x256xf32>
    tpu.vector_store %arg8[%c0_33, %c0_34], %116 {strides = array<i32>} : memref<16x256xf32, #tpu.memory_space<vmem>>, vector<16x256xf32>,
    return
  }
  func.func @transform_0(%arg0: i32) -> (i32, i32) {
    %c0_i32 = arith.constant 0 : i32
    %c0_i32_0 = arith.constant 0 : i32
    return %arg0, %c0_i32 : i32, i32
  }
  func.func @transform_1(%arg0: i32) -> (i32, i32) {
    %c0_i32 = arith.constant 0 : i32
    %c0_i32_0 = arith.constant 0 : i32
    %c0_i32_1 = arith.constant 0 : i32
    return %c0_i32, %c0_i32_0 : i32, i32
  }
  func.func @transform_2(%arg0: i32) -> (i32, i32) {
    %c0_i32 = arith.constant 0 : i32
    %c0_i32_0 = arith.constant 0 : i32
    %c0_i32_1 = arith.constant 0 : i32
    return %c0_i32, %c0_i32_0 : i32, i32
  }
  func.func @transform_3(%arg0: i32) -> (i32, i32) {
    %c0_i32 = arith.constant 0 : i32
    %c0_i32_0 = arith.constant 0 : i32
    %c0_i32_1 = arith.constant 0 : i32
    return %c0_i32, %c0_i32_0 : i32, i32
  }
  func.func @transform_4(%arg0: i32) -> (i32, i32) {
    %c0_i32 = arith.constant 0 : i32
    %c0_i32_0 = arith.constant 0 : i32
    %c0_i32_1 = arith.constant 0 : i32
    return %c0_i32, %c0_i32_0 : i32, i32
  }
  func.func @transform_5(%arg0: i32) -> (i32, i32) {
    %c0_i32 = arith.constant 0 : i32
    %c0_i32_0 = arith.constant 0 : i32
    %c0_i32_1 = arith.constant 0 : i32
    return %c0_i32, %c0_i32_0 : i32, i32
  }
  func.func @transform_6(%arg0: i32) -> (i32, i32) {
    %c0_i32 = arith.constant 0 : i32
    %c0_i32_0 = arith.constant 0 : i32
    %c0_i32_1 = arith.constant 0 : i32
    return %c0_i32, %c0_i32_0 : i32, i32
  }
  func.func @transform_7(%arg0: i32) -> (i32, i32) {
    %c0_i32 = arith.constant 0 : i32
    %c0_i32_0 = arith.constant 0 : i32
    return %arg0, %c0_i32 : i32, i32
  }
}

</mosaic_0001>

<bundles_post_ra>
// kernel: tpu_custom_call.1
= control target key start
LH: loop header
LB: loop body
LE: loop exit
PB: predicated region body
PF: predicated region fallthrough
CT: control target
= control target key end

     0   :  { %s6457_s0 = inlined_call_operand.hbm [shape: f32[32,256], index: 0, kind: input, shape index: {}]   ;;  %s6458_s1 = inlined_call_operand.hbm [shape: bf16[256,896], index: 1, kind: input, shape index: {}]   ;;  %s6459_s2 = inlined_call_operand.hbm [shape: bf16[2048,128], index: 2, kind: input, shape index: {}]   ;;  %s6460_s3 = inlined_call_operand.hbm [shape: bf16[128,2048], index: 3, kind: input, shape index: {}]   ;;  %s6461_s4 = inlined_call_operand.hbm [shape: bf16[384,256], index: 4, kind: input, shape index: {}]   ;;  %s6462_s5 = inlined_call_operand.vmem [shape: f32[1,256], index: 5, kind: input, shape index: {}]   ;;  %s6463_s6 = inlined_call_operand.vmem [shape: f32[1,128], index: 6, kind: input, shape index: {}]   ;;  %s6464_s7 = inlined_call_operand.hbm [shape: f32[32,256], index: 7, kind: output, shape index: {}]  }
   0x1   :  { %6469 = sst [smem:[#allocation16_spill]] %s6458_s1 }
   0x2   :  { %12 = vsyncpa [#allocation3], 0 }
   0x3   :  { %14 = vsyncpa [#allocation3 + $0x1], 0 }
   0x4   :  { %15 = vsyncpa [#allocation6], 0 }
   0x5   :  { %16 = vsyncpa [#allocation9], 0 }
   0x6   :  { %17 = vsyncpa [#allocation4], 0 }
   0x7   :  { %19 = vsyncpa [#allocation4 + $0x1], 0  ;;  %s5947_s24 = smov 0   ;;  %s5949_s25 = smov 0  }
   0x8   :  { %s5951_s26 = smov 0   ;;  %s5953_s27 = smov 0  }
   0x9 LB: > { %s5968_s28 = sadd.s32 4294967295, %s5881_s27   ;;  %s4557_s29 = sadd.s32 4294967294, %s5881_s27   ;;  %s5881_s27 = sphi %s5953_s27, %s6490_s27   ;;  %s5877_s26 = sphi %s5951_s26, %s6489_s26   ;;  %s5873_s25 = sphi %s5949_s25, %s6488_s25   ;;  %s5869_s24 = sphi %s5947_s24, %s6487_s24  }
   0xa   : > { %p45_p0 = scmp.ne.s32.totalorder %s5873_s25, %s5869_s24  ;;  %p6465_p1 = scmp.eq.s32.totalorder %s5968_s28, 0 }
   0xb   : > { %p201_p3 = scmp.eq.s32.totalorder %s4557_s29, 1  ;;  %p4558_p5 = scmp.ge.s32.totalorder %s5881_s27, 1 }
   0xc   : > { %p5977_p4 = por %p6465_p1, %p45_p0  ;;  %p208_p7 = scmp.lt.s32.totalorder %s5881_s27, 3 }
   0xd   : > { %p5982_p6 = por %p201_p3, %p45_p0  ;;  %s5883_s10 = smov [#allocation5]  }
   0xe   : > { %s6470_s30 = scalar_select %p5977_p4, 1, 0 }
   0xf   : > { %s6471_s8 = scalar_select %p5982_p6, 1, 0 }
  0x10   : > { %p5987_p8 = pnand %p4558_p5, %p208_p7  ;;  %s220_s11 = sshll.u32 %s5883_s10, 4  ;;  %s221_s11 = int_to_ptr.vmem [resolvable:$true] %s220_s11 }
  0x11   : > { %s5884_s13 = smov [#allocation8]   ;;  %s5688_s15 = scalar_lea.vmem %s221_s11, 14336 }
  0x12   : > { %s6472_s9 = scalar_select %p5987_p8, 1, 0 }
  0x13   : > { %p5220_p9 = pneg %p5987_p8  ;;  %s246_s14 = sshll.u32 %s5884_s13, 4  ;;  %s247_s14 = int_to_ptr.vmem [resolvable:$true] %s246_s14 }
  0x14   : > { %p5689_p13 = scmp.ne.s32.totalorder %s221_s11, %s5688_s15  ;;  %p5696_p5 = scmp.lt.s32.totalorder %s221_s11, %s221_s11 }
  0x15   : > { %p5996_p11 = pnand %p5220_p9, %p6465_p1  ;;  %p5697_p7 = scmp.lt.s32.totalorder %s5688_s15, %s5688_s15 }
  0x17   : > { %p5679_p12 = pneg %p5996_p11  ;;  %p5698_p10 = por %p5697_p7, %p5696_p5 }
  0x19   : > { %p5691_p0 = pnand %p5689_p13, %p5679_p12 }
  0x1b   : > { %p5692_p3 = pneg %p5691_p0 }
  0x1d   : > { %p5699_p9 = pnand %p5698_p10, %p5692_p3 }
  0x1f   : > { %5702 = shalt.err (!%p5699_p9)
}
  0x20   : > { %s5885_s16 = smov 448   ;;  %s5886_s17 = smov 28  }
  0x21   : > { %s6474_s1 = sld [smem:[#allocation16_spill]]  ;;  %s5714_s20 = scalar_lea.vmem %s247_s14, 16384 }
  0x22   : > { %p5715_p1 = scmp.ne.s32.totalorder %s247_s14, %s5714_s20  ;;  %p5722_p2 = scmp.lt.s32.totalorder %s247_s14, %s247_s14 }
  0x23   : > { %p5723_p6 = scmp.lt.s32.totalorder %s5714_s20, %s5714_s20 }
  0x24   : > { %p5717_p13 = pnand %p5715_p1, %p5679_p12 }
  0x25   : > { %p5724_p5 = por %p5723_p6, %p5722_p2 }
  0x26   : > { %p5718_p0 = pneg %p5717_p13 }
  0x27   : > { %5223 = dma.hbm_to_vmem [thread:$0]  (!%p5996_p11), %s6474_s1, 14336, %s221_s11, [#allocation6], %s5885_s16, %s5885_s16, %s5886_s17  }
  0x28   : > { %p5725_p10 = pnand %p5724_p5, %p5718_p0 }
  0x2a   : > { %5728 = shalt.err (!%p5725_p10)
}
  0x2b   : > { %s5887_s21 = smov 1024   ;;  %s5888_s22 = smov 64  }
  0x2c   : > { %5229 = dma.hbm_to_vmem [thread:$0]  (!%p5996_p11), %s6460_s3, 16384, %s247_s14, [#allocation9], %s5887_s21, %s5887_s21, %s5888_s22  }
  0x2d   : > { %s5889_s10 = smov [#allocation7]   ;;  %s5890_s13 = smov [#allocation10]  }
  0x2e   : > { %s233_s11 = sshll.u32 %s5889_s10, 4  ;;  %s259_s15 = sshll.u32 %s5890_s13, 4  ;;  %s234_s11 = int_to_ptr.vmem [resolvable:$true] %s233_s11  ;;  %s260_s15 = int_to_ptr.vmem [resolvable:$true] %s259_s15 }
  0x2f   : > { %s5740_s16 = scalar_lea.vmem %s234_s11, 16384  ;;  %p5748_p3 = scmp.lt.s32.totalorder %s234_s11, %s234_s11 }
  0x30   : > { %p5741_p1 = scmp.ne.s32.totalorder %s234_s11, %s5740_s16  ;;  %p5749_p7 = scmp.lt.s32.totalorder %s5740_s16, %s5740_s16 }
  0x32   : > { %p5743_p2 = pnand %p5741_p1, %p5679_p12  ;;  %p5750_p9 = por %p5749_p7, %p5748_p3 }
  0x34   : > { %p5744_p6 = pneg %p5743_p2 }
  0x36   : > { %p5751_p13 = pnand %p5750_p9, %p5744_p6 }
  0x38   : > { %5754 = shalt.err (!%p5751_p13)
}
  0x39   : > { %s5891_s17 = smov 4   ;;  %s5766_s19 = scalar_lea.vmem %s260_s15, 6144 }
  0x3a   : > { %5226 = dma.hbm_to_vmem [thread:$0]  (!%p5996_p11), %s6459_s2, 16384, %s234_s11, [#allocation6], %s5888_s22, %s5888_s22, %s5891_s17  }
  0x3b   : > { %p5767_p0 = scmp.ne.s32.totalorder %s260_s15, %s5766_s19  ;;  %p5774_p1 = scmp.lt.s32.totalorder %s260_s15, %s260_s15 }
  0x3c   : > { %p5775_p2 = scmp.lt.s32.totalorder %s5766_s19, %s5766_s19 }
  0x3d   : > { %p5769_p5 = pnand %p5767_p0, %p5679_p12 }
  0x3e   : > { %p5776_p3 = por %p5775_p2, %p5774_p1 }
  0x3f   : > { %p5770_p10 = pneg %p5769_p5 }
  0x41   : > { %p5777_p6 = pnand %p5776_p3, %p5770_p10 }
  0x43   : > { %5780 = shalt.err (!%p5777_p6)
}
  0x44   : > { %s5892_s20 = smov 128   ;;  %s5893_s21 = smov 8  }
  0x45   : > { %5232 = dma.hbm_to_vmem [thread:$0]  (!%p5996_p11), %s6461_s4, 6144, %s260_s15, [#allocation9], %s5892_s20, %s5892_s20, %s5893_s21  }
  0x46   : > { %s6035_s29 = sadd.s32 1, %s5881_s27   ;;  %s32_s11 = sadd.s32 1, %s5877_s26 }
  0x47   : > { %s29_s10 = ssub.s32 %s5881_s27, %s6035_s29  ;;  %p39_p7 = scmp.ne.s32.totalorder %s5877_s26, %s5873_s25 }
  0x48   : > { %p30_p12 = scmp.eq.s32.totalorder %s29_s10, 0  ;;  %p40_p9 = scmp.eq.s32.totalorder %s5881_s27, 0 }
  0x49   : > { %p5245_p13 = scmp.lt.s32.totalorder %s5881_s27, 2  ;;  %p6475_p5 = scmp.eq.s32.totalorder %s5968_s28, 1 }
  0x4a   : > { %s6045_s13 = scalar_select %p30_p12, %s5877_s26, %s32_s11  }
  0x4b   : > { %p41_p0 = por %p40_p9, %p39_p7  ;;  %p6049_p10 = por %p6475_p5, %p39_p7 }
  0x4c   : > { %s279_s12 = sand.u32 1, %s5877_s26   ;;  %s4999_s17 = sshll.u32 %s5881_s27, 9 }
  0x4d   : > { %s6476_s16 = scalar_select %p6049_p10, 1, 0 }
  0x4e   : > { %s4564_s15 = sshll.u32 %s279_s12, 5  ;;  %s6058_s19 = scalar_lea.hbm %s6457_s0, %s4999_s17 }
  0x4f   : > { %s283_s20 = scalar_lea.vmem [#allocation2], %s4564_s15  ;;  %p6060_p11 = pnand %p5245_p13, %p41_p0 }
  0x50   : > { %s291_s21 = sshll.u32 %s283_s20, 4  ;;  %s6066_s23 = scalar_lea.sflag [#allocation3], %s279_s12  ;;  %s6064_s21 = int_to_ptr.vmem [resolvable:$true] %s291_s21 }
  0x51   : > { %s5781_s10 = scalar_lea.hbm %s6058_s19, 512  ;;  %p5783_p2 = pneg %p6060_p11 }
  0x52   : > { %p5782_p1 = scmp.ne.s32.totalorder %s6058_s19, %s5781_s10  ;;  %s5786_s15 = scalar_lea.hbm %s6457_s0, 1024 }
  0x53   : > { %p5787_p12 = scmp.lt.s32.totalorder %s6058_s19, %s6457_s0  ;;  %p5788_p7 = scmp.lt.s32.totalorder %s5786_s15, %s5781_s10 }
  0x54   : > { %p5784_p3 = pnand %p5783_p2, %p5782_p1 }
  0x55   : > { %p5789_p9 = por %p5788_p7, %p5787_p12 }
  0x56   : > { %p5785_p6 = pneg %p5784_p3 }
  0x58   : > { %p5790_p13 = pnand %p5789_p9, %p5785_p6 }
  0x5a   : > { %5793 = shalt.err (!%p5790_p13)
}
  0x5b   : > { %s5794_s12 = scalar_lea.vmem %s6064_s21, 512  ;;  %s5894_s20 = smov [#allocation2]  }
  0x5c   : > { %p5795_p0 = scmp.ne.s32.totalorder %s6064_s21, %s5794_s12  ;;  %s5799_s1 = sshll.u32 %s5894_s20, 4  ;;  %s5800_s1 = int_to_ptr.vmem [resolvable:$false] %s5799_s1 }
  0x5d   : > { %s5801_s11 = scalar_lea.vmem %s5800_s1, 1024  ;;  %p5802_p3 = scmp.lt.s32.totalorder %s6064_s21, %s5800_s1 }
  0x5e   : > { %p5797_p5 = pnand %p5795_p0, %p5783_p2  ;;  %p5803_p10 = scmp.lt.s32.totalorder %s5801_s11, %s5794_s12 }
  0x60   : > { %p5798_p1 = pneg %p5797_p5  ;;  %p5804_p4 = por %p5803_p10, %p5802_p3 }
  0x62   : > { %p5805_p8 = pnand %p5804_p4, %p5798_p1 }
  0x64   : > { %5808 = shalt.err (!%p5805_p8)
}
  0x65   : > { %s5895_s10 = smov 256   ;;  %s5896_s17 = smov 16  }
  0x66   : > { %5236 = dma.hbm_to_vmem [thread:$0]  (!%p6060_p11), %s6058_s19, 512, %s6064_s21, %s6066_s23, %s5895_s10, %s5895_s10, %s5896_s17  }
  0x67   : > { %p6478_p2 = scmp.ne.s32.totalorder %s6472_s9, 0 }
  0x68   : > { %s6090_s15 = sand.u32 (!%p6478_p2), 1, %s5873_s25   ;;  %p6479_p4 = scmp.ne.s32.totalorder (!%p6478_p2), %s6470_s30, 0 }
  0x69   : > { %303 = sbr.rel (%p6478_p2) target bundleno = 2066 (0x812), region = 48  ;;  %s4569_s1 = sshll.u32 (!%p6478_p2), %s6090_s15, 5 }
  0x6a   : > { %s306_s14 = scalar_lea.sflag (!%p6478_p2), [#allocation3], %s6090_s15  ;;  %s6096_s18 = scalar_lea.vmem (!%p6478_p2), [#allocation2], %s4569_s1 }
  0x6e   : > { %5852 = dma.done.wait (%p6479_p4), %s306_s14, 512  }
  0x6f   : > { %5854 = vsyncadd (%p6479_p4), %s306_s14, 4294966784  ;;  %p6480_p8 = scmp.eq.s32.totalorder %s5968_s28, 0 }
  0x71   : > { %5856 = dma.done.wait (%p6480_p8), [#allocation6], 30720   ;;  %p6481_p10 = pmov %p6480_p8 }
  0x72   : > { %p6482_p11 = pmov %p6480_p8 }
  0x73   : > { %5858 = vsyncadd (%p6481_p10), [#allocation6], 4294936576 }
  0x74   : > { %5860 = dma.done.wait (%p6482_p11), [#allocation9], 22528   ;;  %p6483_p6 = pmov %p6480_p8 }
  0x75   : > { %v5305_v0 = vld [vmem:[#allocation5 + $0x18c] ss:$28 sps:$4 sm:$0xff]   ;;  %v5307_v1 = vld [vmem:[#allocation5 + $0x194] ss:$28 sps:$4 sm:$0xff]   ;;  %v5313_v5 = vld [vmem:[#allocation5 + $0x15c] ss:$28 sps:$4 sm:$0xff]  }
  0x76   : > { %5862 = vsyncadd (%p6483_p6), [#allocation9], 4294944768  ;;  %1069 = vmatprep.subr.bf16.mxu0 %v5305_v0  ;;  %v5309_v2 = vld [vmem:[#allocation5 + $0x188] ss:$28 sps:$4 sm:$0xff]   ;;  %v5310_v3 = vld [vmem:[#allocation5 + $0x190] ss:$28 sps:$4 sm:$0xff]   ;;  %1112 = vmatprep.subr.bf16.mxu1 %v5307_v1 }
  0x77   : > { %v5311_v4 = vld [vmem:[#allocation5 + $0x154] ss:$28 sps:$4 sm:$0xff]   ;;  %1070 = vmatpush1.bf16.msra.mxu0 %v5309_v2  ;;  %1113 = vmatpush1.bf16.msra.mxu1 %v5310_v3  ;;  %v5317_v8 = vld [vmem:[#allocation5 + $0x11c] ss:$28 sps:$4 sm:$0xff]   ;;  %v5319_v9 = vld [vmem:[#allocation5 + $0x124] ss:$28 sps:$4 sm:$0xff]  }
  0x78   : > { %v5315_v6 = vld [vmem:[#allocation5 + $0x150] ss:$28 sps:$4 sm:$0xff]   ;;  %1071 = vmatprep.subr.bf16.mxu0 %v5311_v4  ;;  %v5316_v7 = vld [vmem:[#allocation5 + $0x158] ss:$28 sps:$4 sm:$0xff]   ;;  %1114 = vmatprep.subr.bf16.mxu1 %v5313_v5  ;;  %v5322_v11 = vld [vmem:[#allocation5 + $0x120] ss:$28 sps:$4 sm:$0xff]  }
  0x79   : > { %v5321_v10 = vld [vmem:[#allocation5 + $0x118] ss:$28 sps:$4 sm:$0xff]   ;;  %v5323_v12 = vld [vmem:[#allocation5 + $0xe4] ss:$28 sps:$4 sm:$0xff]   ;;  %v5325_v13 = vld [vmem:[#allocation5 + $0xec] ss:$28 sps:$4 sm:$0xff]  }
  0x7a   : > { %v5327_v14 = vld [vmem:[#allocation5 + $0xe0] ss:$28 sps:$4 sm:$0xff]   ;;  %v5328_v15 = vld [vmem:[#allocation5 + $0xe8] ss:$28 sps:$4 sm:$0xff]   ;;  %v5331_v17 = vld [vmem:[#allocation5 + $0xb4] ss:$28 sps:$4 sm:$0xff]  }
  0x7b   : > { %1072 = vmatpush1.bf16.msra.mxu0 %v5315_v6  ;;  %1115 = vmatpush1.bf16.msra.mxu1 %v5316_v7  ;;  %v5329_v16 = vld [vmem:[#allocation5 + $0xac] ss:$28 sps:$4 sm:$0xff]   ;;  %v5335_v20 = vld [vmem:[#allocation5 + $0x74] ss:$28 sps:$4 sm:$0xff]   ;;  %v5337_v21 = vld [vmem:[#allocation5 + $0x7c] ss:$28 sps:$4 sm:$0xff]  }
  0x7c   : > { %1073 = vmatprep.subr.bf16.mxu0 %v5317_v8  ;;  %1116 = vmatprep.subr.bf16.mxu1 %v5319_v9  ;;  %v5333_v18 = vld [vmem:[#allocation5 + $0xa8] ss:$28 sps:$4 sm:$0xff]   ;;  %v5334_v19 = vld [vmem:[#allocation5 + $0xb0] ss:$28 sps:$4 sm:$0xff]   ;;  %v5340_v23 = vld [vmem:[#allocation5 + $0x78] ss:$28 sps:$4 sm:$0xff]  }
  0x7d   : > { %v5339_v22 = vld [vmem:[#allocation5 + $0x70] ss:$28 sps:$4 sm:$0xff]   ;;  %v5341_v24 = vld [vmem:[#allocation5 + $0x3c] ss:$28 sps:$4 sm:$0xff]   ;;  %v5343_v25 = vld [vmem:[#allocation5 + $0x44] ss:$28 sps:$4 sm:$0xff]  }
  0x7e   : > { %v5345_v26 = vld [vmem:[#allocation5 + $0x38] ss:$28 sps:$4 sm:$0xff]   ;;  %v5346_v27 = vld [vmem:[#allocation5 + $0x40] ss:$28 sps:$4 sm:$0xff]   ;;  %v5349_v29 = vld [vmem:[#allocation5 + $0xc] ss:$28 sps:$4 sm:$0xff]  }
  0x7f   : > { %1074 = vmatpush1.bf16.msra.mxu0 %v5321_v10  ;;  %1117 = vmatpush1.bf16.msra.mxu1 %v5322_v11  ;;  %v5347_v28 = vld [vmem:[#allocation5 + $0x4] ss:$28 sps:$4 sm:$0xff]   ;;  %v5353_v32 = vld [vmem:[#allocation5 + $0x34c] ss:$28 sps:$4 sm:$0xff]   ;;  %v5355_v33 = vld [vmem:[#allocation5 + $0x354] ss:$28 sps:$4 sm:$0xff]  }
  0x80   : > { %1075 = vmatprep.subr.bf16.mxu0 %v5323_v12  ;;  %1118 = vmatprep.subr.bf16.mxu1 %v5325_v13  ;;  %v5351_v30 = vld [vmem:[#allocation5] ss:$28 sps:$4 sm:$0xff]   ;;  %v5352_v31 = vld [vmem:[#allocation5 + $0x8] ss:$28 sps:$4 sm:$0xff]   ;;  %v5358_v35 = vld [vmem:[#allocation5 + $0x350] ss:$28 sps:$4 sm:$0xff]  }
  0x81   : > { %v5357_v34 = vld [vmem:[#allocation5 + $0x348] ss:$28 sps:$4 sm:$0xff]   ;;  %v5359_v36 = vld [vmem:[#allocation5 + $0x314] ss:$28 sps:$4 sm:$0xff]   ;;  %v5361_v37 = vld [vmem:[#allocation5 + $0x31c] ss:$28 sps:$4 sm:$0xff]  }
  0x82   : > { %v5363_v38 = vld [vmem:[#allocation5 + $0x310] ss:$28 sps:$4 sm:$0xff]   ;;  %v5364_v39 = vld [vmem:[#allocation5 + $0x318] ss:$28 sps:$4 sm:$0xff]   ;;  %v5367_v41 = vld [vmem:[#allocation5 + $0x2e4] ss:$28 sps:$4 sm:$0xff]  }
  0x83   : > { %1076 = vmatpush1.bf16.msra.mxu0 %v5327_v14  ;;  %1119 = vmatpush1.bf16.msra.mxu1 %v5328_v15  ;;  %v5365_v40 = vld [vmem:[#allocation5 + $0x2dc] ss:$28 sps:$4 sm:$0xff]   ;;  %v5371_v44 = vld [vmem:[#allocation5 + $0x2a4] ss:$28 sps:$4 sm:$0xff]   ;;  %v5373_v45 = vld [vmem:[#allocation5 + $0x2ac] ss:$28 sps:$4 sm:$0xff]  }
  0x84   : > { %1077 = vmatprep.subr.bf16.mxu0 %v5329_v16  ;;  %1120 = vmatprep.subr.bf16.mxu1 %v5331_v17  ;;  %v5369_v42 = vld [vmem:[#allocation5 + $0x2d8] ss:$28 sps:$4 sm:$0xff]   ;;  %v5370_v43 = vld [vmem:[#allocation5 + $0x2e0] ss:$28 sps:$4 sm:$0xff]   ;;  %v360_v46 = vld [vmem:[%s6096_s18 + $0x8] sm:$0xff]  ;;  %s5897_s30 = smov 32  }
  0x85   : > { %v5375_v47 = vld [vmem:[#allocation5 + $0x2a0] ss:$28 sps:$4 sm:$0xff]   ;;  %v5376_v48 = vld [vmem:[#allocation5 + $0x2a8] ss:$28 sps:$4 sm:$0xff]   ;;  %v5379_v52 = vld [vmem:[#allocation5 + $0x274] ss:$28 sps:$4 sm:$0xff]  }
  0x86   : > { %v362_v49 = vld [vmem:[%s6096_s18 + $0x18] sm:$0xff]  ;;  %v5377_v50 = vld [vmem:[#allocation5 + $0x26c] ss:$28 sps:$4 sm:$0xff]   ;;  %v5383_v55 = vld [vmem:[#allocation5 + $0x234] ss:$28 sps:$4 sm:$0xff]   ;;  %s5898_s9 = smov 16  }
  0x87   : > { %1078 = vmatpush1.bf16.msra.mxu0 %v5333_v18  ;;  %1121 = vmatpush1.bf16.msra.mxu1 %v5334_v19  ;;  %v364_v51 = vpack.c.bf16 %v362_v49, %v360_v46  ;;  %v5381_v53 = vld [vmem:[#allocation5 + $0x268] ss:$28 sps:$4 sm:$0xff]   ;;  %v5382_v54 = vld [vmem:[#allocation5 + $0x270] ss:$28 sps:$4 sm:$0xff]   ;;  %v5385_v56 = vld [vmem:[#allocation5 + $0x23c] ss:$28 sps:$4 sm:$0xff]  }
  0x88   : > { %1079 = vmatprep.subr.bf16.mxu0 %v5335_v20  ;;  %1122 = vmatprep.subr.bf16.mxu1 %v5337_v21  ;;  %v5387_v57 = vld [vmem:[#allocation5 + $0x230] ss:$28 sps:$4 sm:$0xff]   ;;  %v5388_v58 = vld [vmem:[#allocation5 + $0x238] ss:$28 sps:$4 sm:$0xff]   ;;  %v5391_v60 = vld [vmem:[#allocation5 + $0x204] ss:$28 sps:$4 sm:$0xff]  }
  0x89   : > { %1101 = vmatprep.mubr.bf16.mxu0 %v364_v51  ;;  %1144 = vmatprep.mubr.bf16.mxu1 %v364_v51  ;;  %v5389_v59 = vld [vmem:[#allocation5 + $0x1fc] ss:$28 sps:$4 sm:$0xff]   ;;  %v5395_v63 = vld [vmem:[#allocation5 + $0x1c4] ss:$28 sps:$4 sm:$0xff]   ;;  %v5397_v0 = vld [vmem:[#allocation5 + $0x1cc] ss:$28 sps:$4 sm:$0xff]  }
  0x8a   : > { %v5393_v61 = vld [vmem:[#allocation5 + $0x1f8] ss:$28 sps:$4 sm:$0xff]   ;;  %v5394_v62 = vld [vmem:[#allocation5 + $0x200] ss:$28 sps:$4 sm:$0xff]   ;;  %v5400_v2 = vld [vmem:[#allocation5 + $0x1c8] ss:$28 sps:$4 sm:$0xff]  }
  0x8b   : > { %1080 = vmatpush1.bf16.msra.mxu0 %v5339_v22  ;;  %1123 = vmatpush1.bf16.msra.mxu1 %v5340_v23  ;;  %v5399_v1 = vld [vmem:[#allocation5 + $0x1c0] ss:$28 sps:$4 sm:$0xff]   ;;  %v361_v4 = vld [vmem:[%s6096_s18 + $0x10] sm:$0xff]  ;;  %v5403_v8 = vld [vmem:[#allocation5 + $0x328] ss:$28 sps:$4 sm:$0xff]   ;;  %s5899_s19 = smov 48  }
  0x8c   : > { %1081 = vmatprep.subr.bf16.mxu0 %v5341_v24  ;;  %1124 = vmatprep.subr.bf16.mxu1 %v5343_v25  ;;  %v359_v3 = vld [vmem:[%s6096_s18] sm:$0xff]  ;;  %v5405_v10 = vld [vmem:[#allocation5 + $0x2f0] ss:$28 sps:$4 sm:$0xff]   ;;  %v5407_v12 = vld [vmem:[#allocation5 + $0x2b8] ss:$28 sps:$4 sm:$0xff]   ;;  %s5900_s21 = smov 64  }
  0x8d   : > { %v5401_v5 = vld [vmem:[#allocation5 + $0x360] ss:$28 sps:$4 sm:$0xff]   ;;  %v6114_v6 = vpack.c.bf16 %v361_v4, %v359_v3  ;;  %v5404_v9 = vld [vmem:[#allocation5 + $0x168] ss:$28 sps:$4 sm:$0xff]   ;;  %v5406_v11 = vld [vmem:[#allocation5 + $0x130] ss:$28 sps:$4 sm:$0xff]  }
  0x8e   : > { %v5402_v7 = vld [vmem:[#allocation5 + $0x1a0] ss:$28 sps:$4 sm:$0xff]   ;;  %v5408_v13 = vld [vmem:[#allocation5 + $0xf8] ss:$28 sps:$4 sm:$0xff]   ;;  %v5411_v16 = vld [vmem:[#allocation5 + $0x248] ss:$28 sps:$4 sm:$0xff]  }
  0x8f   : > { %1082 = vmatpush1.bf16.msra.mxu0 %v5345_v26  ;;  %1125 = vmatpush1.bf16.msra.mxu1 %v5346_v27  ;;  %v5409_v14 = vld [vmem:[#allocation5 + $0x280] ss:$28 sps:$4 sm:$0xff]   ;;  %v5412_v17 = vld [vmem:[#allocation5 + $0x88] ss:$28 sps:$4 sm:$0xff]   ;;  %v5413_v18 = vld [vmem:[#allocation5 + $0x210] ss:$28 sps:$4 sm:$0xff]  }
  0x90   : > { %1083 = vmatprep.subr.bf16.mxu0 %v5347_v28  ;;  %1126 = vmatprep.subr.bf16.mxu1 %v5349_v29  ;;  %v5410_v15 = vld [vmem:[#allocation5 + $0xc0] ss:$28 sps:$4 sm:$0xff]   ;;  %v5414_v19 = vld [vmem:[#allocation5 + $0x50] ss:$28 sps:$4 sm:$0xff]   ;;  %v5415_v20 = vld [vmem:[#allocation5 + $0x1d8] ss:$28 sps:$4 sm:$0xff]  }
  0x91   : > { %v5416_v21 = vld [vmem:[#allocation5 + $0x18] ss:$28 sps:$4 sm:$0xff]   ;;  %v5421_v26 = vld [vmem:[#allocation7 + $0x68] sm:$0xff]   ;;  %v5423_v28 = vld [vmem:[#allocation7 + $0x60] sm:$0xff]   ;;  %s5901_s22 = smov 80   ;;  %s5902_s23 = smov 96  }
  0x92   : > { %v5417_v22 = vld [vmem:[#allocation7 + $0x78] sm:$0xff]   ;;  %v5419_v24 = vld [vmem:[#allocation7 + $0x70] sm:$0xff]   ;;  %v5422_v27 = vld [vmem:[#allocation7 + $0x28] sm:$0xff]   ;;  %s5903_s12 = smov 112   ;;  %vm1265_vm0 = vcmask 261120   ;;  %vm1251_vm1 = vcmask 130048  }
  0x93   : > { %1084 = vmatpush1.bf16.msra.mxu0 %v5351_v30  ;;  %1127 = vmatpush1.bf16.msra.mxu1 %v5352_v31  ;;  %v5418_v23 = vld [vmem:[#allocation7 + $0x38] sm:$0xff]   ;;  %v5420_v25 = vld [vmem:[#allocation7 + $0x30] sm:$0xff]   ;;  %v5424_v29 = vld [vmem:[#allocation7 + $0x20] sm:$0xff]   ;;  %vm1278_vm2 = vcmask 392192   ;;  %vm1291_vm3 = vcmask 523264   ;;  %vm1304_vm4 = vcmask 654336  }
  0x94   : > { %1085 = vmatprep.subr.bf16.mxu0 %v5353_v32  ;;  %1128 = vmatprep.subr.bf16.mxu1 %v5355_v33  ;;  %v5425_v30 = vld [vmem:[#allocation7 + $0x58] sm:$0xff]   ;;  %v5427_v32 = vld [vmem:[#allocation7 + $0x50] sm:$0xff]   ;;  %v5450_v49 = vld [vmem:[#allocation5 + $0x84] ss:$28 sps:$4 sm:$0xff]   ;;  %vm1317_vm5 = vcmask 785408   ;;  %vm1330_vm6 = vcmask 916480  }
  0x95   : > { %v5426_v31 = vld [vmem:[#allocation7 + $0x18] sm:$0xff]   ;;  %v5428_v33 = vld [vmem:[#allocation7 + $0x10] sm:$0xff]   ;;  %v5477_v3 = vld [vmem:[#allocation5 + $0x20c] ss:$28 sps:$4 sm:$0xff]   ;;  %s355_s14 = scalar_lea.vmem [#allocation11], %s4569_s1  ;;  %p6484_p7 = scmp.ne.s32.totalorder %s6476_s16, 0 }
  0x96   : > { %v5447_v46 = vld [vmem:[#allocation5 + $0xbc] ss:$28 sps:$4 sm:$0xff]   ;;  %v5475_v4 = vld [vmem:[#allocation5 + $0x208] ss:$28 sps:$4 sm:$0xff]  }
  0x97   : > { %1086 = vmatpush2.bf16.msra.mxu0 %v5357_v34  ;;  %1129 = vmatpush2.bf16.msra.mxu1 %v5358_v35  ;;  %v5429_v34 = vld [vmem:[#allocation7 + $0x48] sm:$0xff]  }
  0x98   : > { %1087 = vmatprep.subr.bf16.mxu0 %v5359_v36  ;;  %1130 = vmatprep.subr.bf16.mxu1 %v5361_v37  ;;  %v5430_v35 = vld [vmem:[#allocation7 + $0x8] sm:$0xff]   ;;  %v5431_v36 = vld [vmem:[#allocation7 + $0x40] sm:$0xff]  }
  0x99   : > { %v5432_v37 = vld [vmem:[#allocation7] sm:$0xff]  }
  0x9b   : > { %1088 = vmatpush2.bf16.msra.mxu0 %v5363_v38  ;;  %1131 = vmatpush2.bf16.msra.mxu1 %v5364_v39  ;;  %v5433_v38 = vld [vmem:[#allocation5 + $0x198] ss:$28 sps:$4 sm:$0xff]  }
  0x9c   : > { %1089 = vmatprep.subr.bf16.mxu0 %v5365_v40  ;;  %1132 = vmatprep.subr.bf16.mxu1 %v5367_v41  ;;  %v5435_v39 = vld [vmem:[#allocation5 + $0x19c] ss:$28 sps:$4 sm:$0xff]   ;;  %v5438_v41 = vld [vmem:[#allocation5 + $0x164] ss:$28 sps:$4 sm:$0xff]  }
  0x9d   : > { %v5436_v40 = vld [vmem:[#allocation5 + $0x160] ss:$28 sps:$4 sm:$0xff]  }
  0x9f   : > { %1090 = vmatpush2.bf16.msra.mxu0 %v5369_v42  ;;  %1133 = vmatpush2.bf16.msra.mxu1 %v5370_v43  ;;  %v5441_v42 = vld [vmem:[#allocation5 + $0x12c] ss:$28 sps:$4 sm:$0xff]  }
  0xa0   : > { %1091 = vmatprep.subr.bf16.mxu0 %v5371_v44  ;;  %1134 = vmatprep.subr.bf16.mxu1 %v5373_v45  ;;  %v5439_v43 = vld [vmem:[#allocation5 + $0x128] ss:$28 sps:$4 sm:$0xff]   ;;  %v5444_v44 = vld [vmem:[#allocation5 + $0xf4] ss:$28 sps:$4 sm:$0xff]  }
  0xa1   : > { %v5442_v45 = vld [vmem:[#allocation5 + $0xf0] ss:$28 sps:$4 sm:$0xff]  }
  0xa3   : > { %1092 = vmatpush2.bf16.msra.mxu0 %v5375_v47  ;;  %1135 = vmatpush2.bf16.msra.mxu1 %v5376_v48  ;;  %v5482_v47 = vld [vmem:[#allocation7 + $0x178] sm:$0xff]  }
  0xa4   : > { %1093 = vmatprep.subr.bf16.mxu0 %v5377_v50  ;;  %1136 = vmatprep.subr.bf16.mxu1 %v5379_v52  ;;  %v5445_v48 = vld [vmem:[#allocation5 + $0xb8] ss:$28 sps:$4 sm:$0xff]   ;;  %v5448_v50 = vld [vmem:[#allocation5 + $0x80] ss:$28 sps:$4 sm:$0xff]   ;;  %v5451_v52 = vld [vmem:[#allocation5 + $0x48] ss:$28 sps:$4 sm:$0xff]  }
  0xa7   : > { %1094 = vmatpush2.bf16.msra.mxu0 %v5381_v53  ;;  %1137 = vmatpush2.bf16.msra.mxu1 %v5382_v54  ;;  %v5456_v53 = vld [vmem:[#allocation5 + $0x14] ss:$28 sps:$4 sm:$0xff]  }
  0xa8   : > { %1095 = vmatprep.subr.bf16.mxu0 %v5383_v55  ;;  %1138 = vmatprep.subr.bf16.mxu1 %v5385_v56  ;;  %v5454_v54 = vld [vmem:[#allocation5 + $0x10] ss:$28 sps:$4 sm:$0xff]   ;;  %v5459_v55 = vld [vmem:[#allocation5 + $0x35c] ss:$28 sps:$4 sm:$0xff]  }
  0xa9   : > { %v5457_v56 = vld [vmem:[#allocation5 + $0x358] ss:$28 sps:$4 sm:$0xff]  }
  0xab   : > { %1096 = vmatpush2.bf16.msra.mxu0 %v5387_v57  ;;  %1139 = vmatpush2.bf16.msra.mxu1 %v5388_v58  ;;  %v5462_v57 = vld [vmem:[#allocation5 + $0x324] ss:$28 sps:$4 sm:$0xff]  }
  0xac   : > { %1097 = vmatprep.subr.bf16.mxu0 %v5389_v59  ;;  %1140 = vmatprep.subr.bf16.mxu1 %v5391_v60  ;;  %v5460_v58 = vld [vmem:[#allocation5 + $0x320] ss:$28 sps:$4 sm:$0xff]   ;;  %v5465_v59 = vld [vmem:[#allocation5 + $0x2ec] ss:$28 sps:$4 sm:$0xff]  }
  0xad   : > { %v5463_v60 = vld [vmem:[#allocation5 + $0x2e8] ss:$28 sps:$4 sm:$0xff]  }
  0xaf   : > { %1098 = vmatpush2.bf16.msra.mxu0 %v5393_v61  ;;  %1141 = vmatpush2.bf16.msra.mxu1 %v5394_v62  ;;  %v5468_v61 = vld [vmem:[#allocation5 + $0x2b4] ss:$28 sps:$4 sm:$0xff]  }
  0xb0   : > { %1099 = vmatprep.subr.bf16.mxu0 %v5395_v63  ;;  %1142 = vmatprep.subr.bf16.mxu1 %v5397_v0  ;;  %v5466_v62 = vld [vmem:[#allocation5 + $0x2b0] ss:$28 sps:$4 sm:$0xff]   ;;  %v5471_v63 = vld [vmem:[#allocation5 + $0x27c] ss:$28 sps:$4 sm:$0xff]  }
  0xb1   : > { %v5469_v0 = vld [vmem:[#allocation5 + $0x278] ss:$28 sps:$4 sm:$0xff]  }
  0xb3   : > { %1100 = vmatpush2.bf16.msra.mxu0 %v5399_v1  ;;  %1143 = vmatpush2.bf16.msra.mxu1 %v5400_v2  ;;  %v5474_v1 = vld [vmem:[#allocation5 + $0x244] ss:$28 sps:$4 sm:$0xff]  }
  0xb4   : > { %5002 = vmatprep.subr.bf16.mxu1 %v5401_v5  ;;  %1155 = vmatprep.subr.bf16.mxu0 %v5435_v39  ;;  %v5472_v2 = vld [vmem:[#allocation5 + $0x240] ss:$28 sps:$4 sm:$0xff]   ;;  %v5480_v5 = vld [vmem:[#allocation5 + $0x1d4] ss:$28 sps:$4 sm:$0xff]  }
  0xb5   : > { %v5486_v39 = vld [vmem:[#allocation7 + $0x170] sm:$0xff]  }
  0xb6   : > { %1102 = vmatmul.mubr.bf16.vlgmr.msra.gmra.mxu0 %v6114_v6  ;;  %1145 = vmatmul.mubr.bf16.vlgmr.msra.gmra.mxu1 %v6114_v6 }
  0xb7   : > { %5003 = vmatpush3.bf16.msra.mxu1 %v5402_v7  ;;  %1230 = vmatprep.mubr.bf16.mxu1 %v364_v51  ;;  %v5478_v7 = vld [vmem:[#allocation5 + $0x1d0] ss:$28 sps:$4 sm:$0xff]  }
  0xb8   : > { %5004 = vmatprep.subr.bf16.mxu1 %v5403_v8  ;;  %1187 = vmatprep.mubr.bf16.mxu0 %v364_v51  ;;  %v5453_v51 = vld [vmem:[#allocation5 + $0x4c] ss:$28 sps:$4 sm:$0xff]   ;;  %v5481_v8 = vld [vmem:[#allocation7 + $0xf8] sm:$0xff]  }
  0xb9   : > { %1156 = vmatpush1.bf16.msra.mxu0 %v5433_v38 }
  0xba   : > { %1157 = vmatprep.subr.bf16.mxu0 %v5438_v41  ;;  %v5490_v41 = vld [vmem:[#allocation7 + $0x168] sm:$0xff]  }
  0xbb   : > { %5005 = vmatpush3.bf16.msra.mxu1 %v5404_v9  ;;  %v5483_v9 = vld [vmem:[#allocation7 + $0xb8] sm:$0xff]  }
  0xbc   : > { %5006 = vmatprep.subr.bf16.mxu1 %v5405_v10  ;;  %v5485_v10 = vld [vmem:[#allocation7 + $0xf0] sm:$0xff]  }
  0xbd   : > { %1158 = vmatpush1.bf16.msra.mxu0 %v5436_v40  ;;  %v5488_v40 = vld [vmem:[#allocation7 + $0x130] sm:$0xff]  }
  0xbe   : > { %1159 = vmatprep.subr.bf16.mxu0 %v5441_v42  ;;  %v5492_v42 = vld [vmem:[#allocation7 + $0x128] sm:$0xff]  }
  0xbf   : > { %5007 = vmatpush3.bf16.msra.mxu1 %v5406_v11  ;;  %v5487_v11 = vld [vmem:[#allocation7 + $0xb0] sm:$0xff]  }
  0xc0   : > { %5008 = vmatprep.subr.bf16.mxu1 %v5407_v12  ;;  %v5489_v12 = vld [vmem:[#allocation7 + $0xe8] sm:$0xff]  }
  0xc1   : > { %1160 = vmatpush1.bf16.msra.mxu0 %v5439_v43  ;;  %v5494_v43 = vld [vmem:[#allocation7 + $0x160] sm:$0xff]  }
  0xc2   : > { %1161 = vmatprep.subr.bf16.mxu0 %v5444_v44  ;;  %v5496_v44 = vld [vmem:[#allocation7 + $0x120] sm:$0xff]  }
  0xc3   : > { %5009 = vmatpush3.bf16.msra.mxu1 %v5408_v13  ;;  %v5491_v13 = vld [vmem:[#allocation7 + $0xa8] sm:$0xff]  }
  0xc4   : > { %5010 = vmatprep.subr.bf16.mxu1 %v5409_v14  ;;  %v5493_v14 = vld [vmem:[#allocation7 + $0xe0] sm:$0xff]  }
  0xc5   : > { %1162 = vmatpush1.bf16.msra.mxu0 %v5442_v45  ;;  %v5498_v45 = vld [vmem:[#allocation7 + $0x158] sm:$0xff]  }
  0xc6   : > { %1163 = vmatprep.subr.bf16.mxu0 %v5447_v46  ;;  %v5500_v46 = vld [vmem:[#allocation7 + $0x118] sm:$0xff]  }
  0xc7   : > { %5011 = vmatpush3.bf16.msra.mxu1 %v5410_v15  ;;  %v5495_v15 = vld [vmem:[#allocation7 + $0xa0] sm:$0xff]  }
  0xc8   : > { %5012 = vmatprep.subr.bf16.mxu1 %v5411_v16  ;;  %v5497_v16 = vld [vmem:[#allocation7 + $0xd8] sm:$0xff]  }
  0xc9   : > { %1164 = vmatpush1.bf16.msra.mxu0 %v5445_v48  ;;  %v5504_v48 = vld [vmem:[#allocation7 + $0x110] sm:$0xff]  }
  0xca   : > { %1165 = vmatprep.subr.bf16.mxu0 %v5450_v49  ;;  %v5506_v49 = vld [vmem:[#allocation7 + $0x148] sm:$0xff]  }
  0xcb   : > { %5013 = vmatpush3.bf16.msra.mxu1 %v5412_v17  ;;  %v5499_v17 = vld [vmem:[#allocation7 + $0x98] sm:$0xff]  }
  0xcc   : > { %5014 = vmatprep.subr.bf16.mxu1 %v5413_v18  ;;  %v5501_v18 = vld [vmem:[#allocation7 + $0xd0] sm:$0xff]  }
  0xcd   : > { %1166 = vmatpush1.bf16.msra.mxu0 %v5448_v50  ;;  %v5508_v50 = vld [vmem:[#allocation7 + $0x108] sm:$0xff]  }
  0xce   : > { %1167 = vmatprep.subr.bf16.mxu0 %v5453_v51  ;;  %v5510_v51 = vld [vmem:[#allocation7 + $0x140] sm:$0xff]  }
  0xcf   : > { %5015 = vmatpush3.bf16.msra.mxu1 %v5414_v19  ;;  %v5503_v19 = vld [vmem:[#allocation7 + $0x90] sm:$0xff]  }
  0xd0   : > { %5016 = vmatprep.subr.bf16.mxu1 %v5415_v20  ;;  %v5507_v20 = vld [vmem:[#allocation7 + $0x88] sm:$0xff]  }
  0xd1   : > { %1168 = vmatpush1.bf16.msra.mxu0 %v5451_v52  ;;  %v5512_v52 = vld [vmem:[#allocation7 + $0x100] sm:$0xff]  }
  0xd2   : > { %1169 = vmatprep.subr.bf16.mxu0 %v5456_v53  ;;  %v5514_v53 = vld [vmem:[#allocation7 + $0x278] sm:$0xff]  }
  0xd3   : > { %5017 = vmatpush3.bf16.msra.mxu1 %v5416_v21  ;;  %v5509_v21 = vld [vmem:[#allocation7 + $0xc0] sm:$0xff]  }
  0xd4   : > { %5024 = vmatprep.subr.bf16.mxu1 %v5417_v22  ;;  %v5511_v22 = vld [vmem:[#allocation7 + $0x80] sm:$0xff]  }
  0xd5   : > { %1170 = vmatpush1.bf16.msra.mxu0 %v5454_v54 }
  0xd6   : > { %1231 = vmatmul.mubr.bf16.vlgmr.msra.gmra.mxu1 %v6114_v6  ;;  %1171 = vmatprep.subr.bf16.mxu0 %v5459_v55 }
  0xd7   : > { %5025 = vmatpush3.bf16.msra.mxu1 %v5418_v23 }
  0xd8   : > { %5026 = vmatprep.subr.bf16.mxu1 %v5419_v24 }
  0xd9   : > { %1172 = vmatpush2.bf16.msra.mxu0 %v5457_v56 }
  0xda   : > { %1173 = vmatprep.subr.bf16.mxu0 %v5462_v57 }
  0xdb   : > { %5027 = vmatpush3.bf16.msra.mxu1 %v5420_v25  ;;  %v5513_v25 = vld [vmem:[#allocation7 + $0x1f8] sm:$0xff]  }
  0xdc   : > { %5028 = vmatprep.subr.bf16.mxu1 %v5421_v26 }
  0xdd   : > { %1174 = vmatpush2.bf16.msra.mxu0 %v5460_v58 }
  0xde   : > { %1175 = vmatprep.subr.bf16.mxu0 %v5465_v59 }
  0xdf   : > { %5029 = vmatpush3.bf16.msra.mxu1 %v5422_v27 }
  0xe0   : > { %5030 = vmatprep.subr.bf16.mxu1 %v5423_v28 }
  0xe1   : > { %1176 = vmatpush2.bf16.msra.mxu0 %v5463_v60 }
  0xe2   : > { %1177 = vmatprep.subr.bf16.mxu0 %v5468_v61 }
  0xe3   : > { %5031 = vmatpush3.bf16.msra.mxu1 %v5424_v29 }
  0xe4   : > { %5032 = vmatprep.subr.bf16.mxu1 %v5425_v30 }
  0xe5   : > { %1178 = vmatpush2.bf16.msra.mxu0 %v5466_v62 }
  0xe6   : > { %1179 = vmatprep.subr.bf16.mxu0 %v5471_v63 }
  0xe7   : > { %5033 = vmatpush3.bf16.msra.mxu1 %v5426_v31 }
  0xe8   : > { %5034 = vmatprep.subr.bf16.mxu1 %v5427_v32 }
  0xe9   : > { %1180 = vmatpush2.bf16.msra.mxu0 %v5469_v0  ;;  %v5515_v0 = vld [vmem:[#allocation7 + $0x1b8] sm:$0xff]  }
  0xea   : > { %1181 = vmatprep.subr.bf16.mxu0 %v5474_v1  ;;  %v5516_v1 = vld [vmem:[#allocation7 + $0x238] sm:$0xff]  }
  0xeb   : > { %5035 = vmatpush3.bf16.msra.mxu1 %v5428_v33 }
  0xec   : > { %5036 = vmatprep.subr.bf16.mxu1 %v5429_v34 }
  0xed   : > { %1182 = vmatpush2.bf16.msra.mxu0 %v5472_v2 }
  0xee   : > { %1183 = vmatprep.subr.bf16.mxu0 %v5477_v3 }
  0xef   : > { %5037 = vmatpush3.bf16.msra.mxu1 %v5430_v35 }
  0xf0   : > { %5038 = vmatprep.subr.bf16.mxu1 %v5431_v36 }
  0xf1   : > { %1184 = vmatpush2.bf16.msra.mxu0 %v5475_v4  ;;  %v5517_v4 = vld [vmem:[#allocation7 + $0x1f0] sm:$0xff]  }
  0xf2   : > { %1185 = vmatprep.subr.bf16.mxu0 %v5480_v5  ;;  %v5518_v5 = vld [vmem:[#allocation7 + $0x270] sm:$0xff]  }
  0xf3   : > { %5039 = vmatpush3.bf16.msra.mxu1 %v5432_v37  ;;  %v5484_v37 = vld [vmem:[#allocation7 + $0x138] sm:$0xff]  }
  0xf4   : > { %5068 = vmatprep.subr.bf16.mxu1 %v5482_v47  ;;  %v5502_v47 = vld [vmem:[#allocation7 + $0x150] sm:$0xff]  }
  0xf5   : > { %1186 = vmatpush2.bf16.msra.mxu0 %v5478_v7 }
  0xf6   : > { %5046 = vmatprep.subr.bf16.mxu0 %v5481_v8 }
  0xf8   : > { %1188 = vmatmul.mubr.bf16.vlgmr.msra.gmra.mxu0 %v6114_v6  ;;  %v5505_v6 = vld [vmem:[#allocation7 + $0xc8] sm:$0xff]  }
  0xf9   : > { %5047 = vmatpush3.bf16.msra.mxu0 %v5483_v9 }
  0xfa   : > { %5048 = vmatprep.subr.bf16.mxu0 %v5485_v10 }
  0xfd   : > { %5049 = vmatpush3.bf16.msra.mxu0 %v5487_v11  ;;  %v5519_v11 = vld [vmem:[#allocation7 + $0x1b0] sm:$0xff]  }
  0xfe   : > { %5050 = vmatprep.subr.bf16.mxu0 %v5489_v12  ;;  %v5520_v12 = vld [vmem:[#allocation7 + $0x230] sm:$0xff]  }
 0x101   : > { %5051 = vmatpush3.bf16.msra.mxu0 %v5491_v13  ;;  %v5521_v13 = vld [vmem:[#allocation7 + $0x1e8] sm:$0xff]  }
 0x102   : > { %5052 = vmatprep.subr.bf16.mxu0 %v5493_v14  ;;  %v5522_v14 = vld [vmem:[#allocation7 + $0x268] sm:$0xff]  }
 0x105   : > { %5053 = vmatpush3.bf16.msra.mxu0 %v5495_v15 }
 0x106   : > { %5054 = vmatprep.subr.bf16.mxu0 %v5497_v16 }
 0x109   : > { %5055 = vmatpush3.bf16.msra.mxu0 %v5499_v17 }
 0x10a   : > { %5056 = vmatprep.subr.bf16.mxu0 %v5501_v18 }
 0x10d   : > { %5057 = vmatpush3.bf16.msra.mxu0 %v5503_v19  ;;  %v5523_v19 = vld [vmem:[#allocation7 + $0x1a8] sm:$0xff]  }
 0x10e   : > { %5058 = vmatprep.subr.bf16.mxu0 %v5505_v6  ;;  %v5524_v6 = vld [vmem:[#allocation7 + $0x228] sm:$0xff]  }
 0x111   : > { %5059 = vmatpush3.bf16.msra.mxu0 %v5507_v20  ;;  %v5525_v20 = vld [vmem:[#allocation7 + $0x1e0] sm:$0xff]  }
 0x112   : > { %5060 = vmatprep.subr.bf16.mxu0 %v5509_v21  ;;  %v5526_v21 = vld [vmem:[#allocation7 + $0x260] sm:$0xff]  }
 0x115   : > { %5061 = vmatpush3.bf16.msra.mxu0 %v5511_v22  ;;  %v5527_v22 = vld [vmem:[#allocation7 + $0x1a0] sm:$0xff]  }
 0x116   : > { %5090 = vmatprep.subr.bf16.mxu0 %v5513_v25  ;;  %v5530_v25 = vld [vmem:[#allocation7 + $0x258] sm:$0xff]  }
 0x176   : > { %v1103_v23 = vpop.f32.mrf.mxu0  ;;  %v1146_v24 = vpop.f32.mrf.mxu1 }
 0x178   : > { %v1105_v26 = vpop.f32.mrf.mxu0  ;;  %v1148_v27 = vpop.f32.mrf.mxu1 }
 0x17a   : > { %v1107_v28 = vpop.f32.mrf.mxu0  ;;  %v1150_v29 = vpop.f32.mrf.mxu1 }
 0x17b   : > { %v1241_v30 = vpack.c.bf16 %v1150_v29, %v1146_v24  ;;  %v6120_v33 = vpack.c.bf16 %v1107_v28, %v1103_v23  ;;  %v5528_v23 = vld [vmem:[#allocation7 + $0x220] sm:$0xff]   ;;  %v5529_v24 = vld [vmem:[#allocation7 + $0x1d8] sm:$0xff]   ;;  %v5533_v28 = vld [vmem:[#allocation7 + $0x1d0] sm:$0xff]  }
 0x17c   : > { %v1109_v31 = vpop.f32.mrf.mxu0  ;;  %v1152_v32 = vpop.f32.mrf.mxu1  ;;  %v5534_v29 = vld [vmem:[#allocation7 + $0x250] sm:$0xff]  }
 0x17d   : > { %v6122_v34 = vpack.c.bf16 %v1109_v31, %v1105_v26  ;;  %v1242_v35 = vpack.c.bf16 %v1152_v32, %v1148_v27  ;;  %1261 = vrot.lane.b32.xlu1 %v1241_v30, %s5897_s30  ;;  %1247 = vrot.lane.b32.xlu0 %v1241_v30, %s5898_s9  ;;  %v1243_v38 = vmul.bf16 %v1241_v30, %v6120_v33  ;;  %v5531_v26 = vld [vmem:[#allocation7 + $0x198] sm:$0xff]   ;;  %v5536_v31 = vld [vmem:[#allocation7 + $0x210] sm:$0xff]   ;;  %v5537_v32 = vld [vmem:[#allocation7 + $0x1c8] sm:$0xff]  }
 0x17e   : > { %v5532_v27 = vld [vmem:[#allocation7 + $0x218] sm:$0xff]  }
 0x17f   : > { %v1244_v36 = vmul.bf16 %v1242_v35, %v6122_v34 }
 0x181   : > { %1263 = vrot.lane.b32.xlu1 %v1242_v35, %s5897_s30  ;;  %1249 = vrot.lane.b32.xlu0 %v1242_v35, %s5898_s9 }
 0x182   : > { %2395 = vmatprep.mubr.bf16.mxu1 %v1244_v36 }
 0x183   : > { %2396 = vmatmul.mubr.bf16.vlgmr.msra.gmra.mxu1 %v1243_v38  ;;  %v5539_v38 = vld [vmem:[#allocation7 + $0x188] sm:$0xff]  }
 0x184   : > { %5069 = vmatpush3.bf16.msra.mxu1 %v5484_v37 }
 0x185   : > { %1276 = vrot.lane.b32.xlu1 %v1242_v35, %s5899_s19  ;;  %1274 = vrot.lane.b32.xlu0 %v1241_v30, %s5899_s19 }
 0x186   : > { %5070 = vmatprep.subr.bf16.mxu1 %v5486_v39  ;;  %v5540_v39 = vld [vmem:[#allocation7 + $0x208] sm:$0xff]  }
 0x188   : > { %5071 = vmatpush3.bf16.msra.mxu1 %v5488_v40  ;;  %v5541_v40 = vld [vmem:[#allocation7 + $0x1c0] sm:$0xff]  }
 0x189   : > { %1289 = vrot.lane.b32.xlu1 %v1242_v35, %s5900_s21  ;;  %1287 = vrot.lane.b32.xlu0 %v1241_v30, %s5900_s21 }
 0x18a   : > { %5072 = vmatprep.subr.bf16.mxu1 %v5490_v41  ;;  %v5542_v41 = vld [vmem:[#allocation7 + $0x240] sm:$0xff]  }
 0x18c   : > { %5073 = vmatpush3.bf16.msra.mxu1 %v5492_v42  ;;  %v5543_v42 = vld [vmem:[#allocation7 + $0x180] sm:$0xff]  }
 0x18d   : > { %1302 = vrot.lane.b32.xlu1 %v1242_v35, %s5901_s22  ;;  %1300 = vrot.lane.b32.xlu0 %v1241_v30, %s5901_s22 }
 0x18e   : > { %5074 = vmatprep.subr.bf16.mxu1 %v5494_v43  ;;  %v5544_v43 = vld [vmem:[#allocation7 + $0x200] sm:$0xff]  }
 0x190   : > { %5075 = vmatpush3.bf16.msra.mxu1 %v5496_v44 }
 0x191   : > { %1315 = vrot.lane.b32.xlu1 %v1242_v35, %s5902_s23  ;;  %1313 = vrot.lane.b32.xlu0 %v1241_v30, %s5902_s23 }
 0x192   : > { %5076 = vmatprep.subr.bf16.mxu1 %v5498_v45 }
 0x194   : > { %5077 = vmatpush3.bf16.msra.mxu1 %v5500_v46  ;;  %v5545_v46 = vld [vmem:[#allocation7 + $0x2f8] sm:$0xff]  }
 0x195   : > { %1328 = vrot.lane.b32.xlu1 %v1242_v35, %s5903_s12  ;;  %1326 = vrot.lane.b32.xlu0 %v1241_v30, %s5903_s12  ;;  %v5535_v30 = vld [vmem:[#allocation7 + $0x190] sm:$0xff]   ;;  %v5538_v35 = vld [vmem:[#allocation7 + $0x248] sm:$0xff]  }
 0x196   : > { %5078 = vmatprep.subr.bf16.mxu1 %v5502_v47  ;;  %v5546_v47 = vld [vmem:[#allocation7 + $0x378] sm:$0xff]  }
 0x198   : > { %5079 = vmatpush3.bf16.msra.mxu1 %v5504_v48 }
 0x199   : > { %5080 = vmatprep.subr.bf16.mxu1 %v5506_v49 }
 0x19c   : > { %5081 = vmatpush3.bf16.msra.mxu1 %v5508_v50 }
 0x19d   : > { %5082 = vmatprep.subr.bf16.mxu1 %v5510_v51 }
 0x1a0   : > { %5083 = vmatpush3.bf16.msra.mxu1 %v5512_v52  ;;  %v5547_v52 = vld [vmem:[#allocation7 + $0x2b8] sm:$0xff]  }
 0x1a1   : > { %5112 = vmatprep.subr.bf16.mxu1 %v5514_v53 }
 0x1ef   : > { %v1262_v54 = vpop.permute.xlu1 %1261  ;;  %v1248_v55 = vpop.permute.xlu0 %1247 }
 0x1f0   : > { %v1270_v56 = vsel %vm1265_vm0, 0, %v1262_v54  ;;  %v1257_v57 = vsel %vm1251_vm1, 0, %v1248_v55 }
 0x1f1   : > { %v1272_v2 = vmul.bf16 %v1270_v56, %v6120_v33  ;;  %v1259_v3 = vmul.bf16 %v1257_v57, %v6120_v33  ;;  %v5549_v57 = vld [vmem:[#allocation7 + $0x2f0] sm:$0xff]  }
 0x1f3   : > { %v1264_v58 = vpop.permute.xlu1 %1263  ;;  %v1250_v59 = vpop.permute.xlu0 %1249 }
 0x1f4   : > { %v1266_v60 = vsel %vm1265_vm0, %v1262_v54, %v1264_v58  ;;  %v1252_v61 = vsel %vm1251_vm1, %v1248_v55, %v1250_v59  ;;  %v5548_v55 = vld [vmem:[#allocation7 + $0x338] sm:$0xff]   ;;  %v5550_v58 = vld [vmem:[#allocation7 + $0x370] sm:$0xff]  }
 0x1f5   : > { %v1273_v62 = vmul.bf16 %v1266_v60, %v6122_v34  ;;  %v1260_v63 = vmul.bf16 %v1252_v61, %v6122_v34  ;;  %v5551_v60 = vld [vmem:[#allocation7 + $0x2b0] sm:$0xff]  }
 0x1f6   : > { %v5552_v61 = vld [vmem:[#allocation7 + $0x330] sm:$0xff]  }
 0x1f7   : > { %v1277_v7 = vpop.permute.xlu1 %1276  ;;  %v6148_v8 = vpop.permute.xlu0 %1274  ;;  %2436 = vmatprep.mubr.bf16.mxu0 %v1260_v63  ;;  %2477 = vmatprep.mubr.bf16.mxu1 %v1273_v62  ;;  %v5553_v62 = vld [vmem:[#allocation7 + $0x2e8] sm:$0xff]  }
 0x1f8   : > { %v1279_v9 = vsel %vm1278_vm2, %v6148_v8, %v1277_v7  ;;  %2437 = vmatmul.mubr.bf16.vlgmr.msra.gmra.mxu0 %v1259_v3  ;;  %2478 = vmatmul.mubr.bf16.vlgmr.msra.gmra.mxu1 %v1272_v2  ;;  %v1283_v48 = vsel %vm1278_vm2, 0, %v6148_v8  ;;  %v5554_v63 = vld [vmem:[#allocation7 + $0x368] sm:$0xff]   ;;  %v5557_v2 = vld [vmem:[#allocation7 + $0x2e0] sm:$0xff]   ;;  %v5561_v7 = vld [vmem:[#allocation7 + $0x2d8] sm:$0xff]  }
 0x1f9   : > { %v1286_v10 = vmul.bf16 %v1279_v9, %v6122_v34  ;;  %5091 = vmatpush3.bf16.msra.mxu0 %v5515_v0  ;;  %5113 = vmatpush3.bf16.msra.mxu1 %v5516_v1  ;;  %v1285_v53 = vmul.bf16 %v1283_v48, %v6120_v33  ;;  %v5555_v0 = vld [vmem:[#allocation7 + $0x2a8] sm:$0xff]   ;;  %v5558_v3 = vld [vmem:[#allocation7 + $0x360] sm:$0xff]   ;;  %v5562_v8 = vld [vmem:[#allocation7 + $0x358] sm:$0xff]  }
 0x1fa   : > { %5092 = vmatprep.subr.bf16.mxu0 %v5517_v4  ;;  %5114 = vmatprep.subr.bf16.mxu1 %v5518_v5  ;;  %v5556_v1 = vld [vmem:[#allocation7 + $0x328] sm:$0xff]   ;;  %v5559_v4 = vld [vmem:[#allocation7 + $0x2a0] sm:$0xff]   ;;  %v5563_v9 = vld [vmem:[#allocation7 + $0x298] sm:$0xff]  }
 0x1fb   : > { %v1290_v15 = vpop.permute.xlu1 %1289  ;;  %v1288_v16 = vpop.permute.xlu0 %1287  ;;  %2518 = vmatprep.mubr.bf16.mxu0 %v1286_v10  ;;  %v5560_v5 = vld [vmem:[#allocation7 + $0x320] sm:$0xff]   ;;  %v5564_v10 = vld [vmem:[#allocation7 + $0x318] sm:$0xff]  }
 0x1fc   : > { %v1292_v17 = vsel %vm1291_vm3, %v1288_v16, %v1290_v15  ;;  %v1296_v49 = vsel %vm1291_vm3, 0, %v1288_v16  ;;  %v5569_v15 = vld [vmem:[#allocation7 + $0x2c8] sm:$0xff]  }
 0x1fd   : > { %v1299_v18 = vmul.bf16 %v1292_v17, %v6122_v34  ;;  %5093 = vmatpush3.bf16.msra.mxu0 %v5519_v11  ;;  %5115 = vmatpush3.bf16.msra.mxu1 %v5520_v12  ;;  %v1298_v54 = vmul.bf16 %v1296_v49, %v6120_v33  ;;  %v5565_v11 = vld [vmem:[#allocation7 + $0x2d0] sm:$0xff]   ;;  %v5570_v16 = vld [vmem:[#allocation7 + $0x348] sm:$0xff]   ;;  %v5018_v49 = vpop.f32.mrf.mxu1 }
 0x1fe   : > { %5094 = vmatprep.subr.bf16.mxu0 %v5521_v13  ;;  %5116 = vmatprep.subr.bf16.mxu1 %v5522_v14  ;;  %v5566_v12 = vld [vmem:[#allocation7 + $0x350] sm:$0xff]   ;;  %v5571_v17 = vld [vmem:[#allocation7 + $0x288] sm:$0xff]  }
 0x1ff   : > { %2559 = vmatprep.mubr.bf16.mxu1 %v1299_v18  ;;  %v1303_v36 = vpop.permute.xlu1 %1302  ;;  %v6155_v37 = vpop.permute.xlu0 %1300  ;;  %v5567_v13 = vld [vmem:[#allocation7 + $0x290] sm:$0xff]   ;;  %v5572_v18 = vld [vmem:[#allocation7 + $0x308] sm:$0xff]  }
 0x200   : > { %v1305_v50 = vsel %vm1304_vm4, %v6155_v37, %v1303_v36  ;;  %v5568_v14 = vld [vmem:[#allocation7 + $0x310] sm:$0xff]   ;;  %v5581_v36 = vld [vmem:[#allocation7 + $0x3e8] sm:$0xff]  }
 0x201   : > { %5095 = vmatpush3.bf16.msra.mxu0 %v5523_v19  ;;  %5117 = vmatpush3.bf16.msra.mxu1 %v5524_v6  ;;  %v1312_v56 = vmul.bf16 %v1305_v50, %v6122_v34  ;;  %v5573_v19 = vld [vmem:[#allocation7 + $0x2c0] sm:$0xff]   ;;  %v5019_v50 = vpop.f32.mrf.mxu1 }
 0x202   : > { %5096 = vmatprep.subr.bf16.mxu0 %v5525_v20  ;;  %5118 = vmatprep.subr.bf16.mxu1 %v5526_v21  ;;  %v5574_v6 = vld [vmem:[#allocation7 + $0x340] sm:$0xff]  }
 0x203   : > { %v1316_v44 = vpop.permute.xlu1 %1315  ;;  %v6157_v45 = vpop.permute.xlu0 %1313  ;;  %v5575_v20 = vld [vmem:[#allocation7 + $0x280] sm:$0xff]  }
 0x204   : > { %v1318_v51 = vsel %vm1317_vm5, %v6157_v45, %v1316_v44  ;;  %v5590_v44 = vld [vmem:[#allocation7 + $0x388] sm:$0xff]  }
 0x205   : > { %5097 = vmatpush3.bf16.msra.mxu0 %v5527_v22  ;;  %5119 = vmatpush3.bf16.msra.mxu1 %v5528_v23  ;;  %v1325_v59 = vmul.bf16 %v1318_v51, %v6122_v34  ;;  %v5576_v23 = vld [vmem:[#allocation7 + $0x300] sm:$0xff]   ;;  %v5021_v51 = vpop.f32.mrf.mxu1 }
 0x206   : > { %5098 = vmatprep.subr.bf16.mxu0 %v5529_v24  ;;  %5120 = vmatprep.subr.bf16.mxu1 %v5530_v25  ;;  %v5577_v24 = vld [vmem:[#allocation7 + $0x3f8] sm:$0xff]   ;;  %v1309_v25 = vsel %vm1304_vm4, 0, %v6155_v37  ;;  %v5582_v37 = vld [vmem:[#allocation7 + $0x3a8] sm:$0xff]  }
 0x207   : > { %v1329_v21 = vpop.permute.xlu1 %1328  ;;  %v1327_v22 = vpop.permute.xlu0 %1326 }
 0x209   : > { %5099 = vmatpush3.bf16.msra.mxu0 %v5531_v26  ;;  %5121 = vmatpush3.bf16.msra.mxu1 %v5532_v27  ;;  %v1322_v26 = vsel %vm1317_vm5, 0, %v6157_v45  ;;  %v1331_v27 = vsel %vm1330_vm6, %v1327_v22, %v1329_v21  ;;  %v5591_v45 = vld [vmem:[#allocation7 + $0x3c0] sm:$0xff]  }
 0x20a   : > { %5100 = vmatprep.subr.bf16.mxu0 %v5533_v28  ;;  %5122 = vmatprep.subr.bf16.mxu1 %v5534_v29  ;;  %v5578_v28 = vld [vmem:[#allocation7 + $0x3b8] sm:$0xff]   ;;  %v1311_v29 = vmul.bf16 %v1309_v25, %v6120_v33 }
 0x20d   : > { %5101 = vmatpush3.bf16.msra.mxu0 %v5535_v30  ;;  %5123 = vmatpush3.bf16.msra.mxu1 %v5536_v31  ;;  %v5579_v30 = vld [vmem:[#allocation7 + $0x3f0] sm:$0xff]   ;;  %v1324_v31 = vmul.bf16 %v1322_v26, %v6120_v33 }
 0x20e   : > { %5102 = vmatprep.subr.bf16.mxu0 %v5537_v32  ;;  %5124 = vmatprep.subr.bf16.mxu1 %v5538_v35  ;;  %v1338_v32 = vmul.bf16 %v1331_v27, %v6122_v34  ;;  %v5580_v35 = vld [vmem:[#allocation7 + $0x3b0] sm:$0xff]  }
 0x20f   : > { %v5588_v34 = vld [vmem:[#allocation7 + $0x390] sm:$0xff]  }
 0x211   : > { %5103 = vmatpush3.bf16.msra.mxu0 %v5539_v38  ;;  %5125 = vmatpush3.bf16.msra.mxu1 %v5540_v39  ;;  %v5583_v38 = vld [vmem:[#allocation7 + $0x3e0] sm:$0xff]  }
 0x212   : > { %5104 = vmatprep.subr.bf16.mxu0 %v5541_v40  ;;  %5126 = vmatprep.subr.bf16.mxu1 %v5542_v41  ;;  %v5584_v39 = vld [vmem:[#allocation7 + $0x3a0] sm:$0xff]   ;;  %v5585_v40 = vld [vmem:[#allocation7 + $0x3d8] sm:$0xff]  }
 0x213   : > { %v5586_v41 = vld [vmem:[#allocation7 + $0x398] sm:$0xff]  }
 0x215   : > { %5105 = vmatpush3.bf16.msra.mxu0 %v5543_v42  ;;  %5127 = vmatpush3.bf16.msra.mxu1 %v5544_v43  ;;  %v5587_v42 = vld [vmem:[#allocation7 + $0x3d0] sm:$0xff]   ;;  %v5589_v43 = vld [vmem:[#allocation7 + $0x3c8] sm:$0xff]  }
 0x216   : > { %5134 = vmatprep.subr.bf16.mxu0 %v5545_v46  ;;  %5156 = vmatprep.subr.bf16.mxu1 %v5546_v47  ;;  %v5592_v46 = vld [vmem:[#allocation7 + $0x380] sm:$0xff]   ;;  %v1335_v47 = vsel %vm1330_vm6, 0, %v1327_v22 }
 0x217   : > { %v1337_v48 = vmul.bf16 %v1335_v47, %v6120_v33 }
 0x218   : > { %2519 = vmatmul.mubr.bf16.vlgmr.msra.gmra.mxu0 %v1285_v53  ;;  %2560 = vmatmul.mubr.bf16.vlgmr.msra.gmra.mxu1 %v1298_v54  ;;  %v5022_v53 = vpop.f32.mrf.mxu1 }
 0x219   : > { %5135 = vmatpush3.bf16.msra.mxu0 %v5547_v52  ;;  %2600 = vmatprep.mubr.bf16.mxu0 %v1312_v56  ;;  %v6180_v52 = vpop.f32.mrf.mxu0 }
 0x21a   : > { %5157 = vmatpush3.bf16.msra.mxu1 %v5548_v55  ;;  %2641 = vmatprep.mubr.bf16.mxu1 %v1325_v59 }
 0x21b   : > { %5136 = vmatprep.subr.bf16.mxu0 %v5549_v57  ;;  %5158 = vmatprep.subr.bf16.mxu1 %v5550_v58  ;;  %v6182_v54 = vpop.f32.mrf.mxu0 }
 0x21d   : > { %5137 = vmatpush3.bf16.msra.mxu0 %v5551_v60  ;;  %v6184_v56 = vpop.f32.mrf.mxu0 }
 0x21e   : > { %5159 = vmatpush3.bf16.msra.mxu1 %v5552_v61  ;;  %5138 = vmatprep.subr.bf16.mxu0 %v5553_v62 }
 0x21f   : > { %5160 = vmatprep.subr.bf16.mxu1 %v5554_v63  ;;  %v6186_v58 = vpop.f32.mrf.mxu0 }
 0x221   : > { %5139 = vmatpush3.bf16.msra.mxu0 %v5555_v0 }
 0x222   : > { %5161 = vmatpush3.bf16.msra.mxu1 %v5556_v1  ;;  %5140 = vmatprep.subr.bf16.mxu0 %v5557_v2 }
 0x223   : > { %5162 = vmatprep.subr.bf16.mxu1 %v5558_v3 }
 0x225   : > { %5141 = vmatpush3.bf16.msra.mxu0 %v5559_v4 }
 0x226   : > { %5163 = vmatpush3.bf16.msra.mxu1 %v5560_v5  ;;  %5142 = vmatprep.subr.bf16.mxu0 %v5561_v7 }
 0x227   : > { %5164 = vmatprep.subr.bf16.mxu1 %v5562_v8 }
 0x229   : > { %5143 = vmatpush3.bf16.msra.mxu0 %v5563_v9 }
 0x22a   : > { %5165 = vmatpush3.bf16.msra.mxu1 %v5564_v10  ;;  %5144 = vmatprep.subr.bf16.mxu0 %v5565_v11  ;;  %v5020_v10 = vadd.f32 %v5019_v50, %v5018_v49 }
 0x22b   : > { %5166 = vmatprep.subr.bf16.mxu1 %v5566_v12 }
 0x22d   : > { %5145 = vmatpush3.bf16.msra.mxu0 %v5567_v13 }
 0x22e   : > { %5167 = vmatpush3.bf16.msra.mxu1 %v5568_v14  ;;  %5146 = vmatprep.subr.bf16.mxu0 %v5569_v15 }
 0x22f   : > { %5168 = vmatprep.subr.bf16.mxu1 %v5570_v16  ;;  %v5023_v16 = vadd.f32 %v5022_v53, %v5021_v51 }
 0x231   : > { %5147 = vmatpush3.bf16.msra.mxu0 %v5571_v17 }
 0x232   : > { %5169 = vmatpush3.bf16.msra.mxu1 %v5572_v18  ;;  %5148 = vmatprep.subr.bf16.mxu0 %v5573_v19 }
 0x233   : > { %5170 = vmatprep.subr.bf16.mxu1 %v5574_v6 }
 0x235   : > { %5149 = vmatpush3.bf16.msra.mxu0 %v5575_v20 }
 0x236   : > { %5171 = vmatpush3.bf16.msra.mxu1 %v5576_v23  ;;  %5178 = vmatprep.subr.bf16.mxu0 %v5577_v24 }
 0x238   : > { %2601 = vmatmul.mubr.bf16.vlgmr.msra.gmra.mxu0 %v1311_v29 }
 0x239   : > { %2642 = vmatmul.mubr.bf16.vlgmr.msra.gmra.mxu1 %v1324_v31  ;;  %5179 = vmatpush3.bf16.msra.mxu0 %v5578_v28 }
 0x23a   : > { %2682 = vmatprep.mubr.bf16.mxu0 %v1338_v32  ;;  %5180 = vmatprep.subr.bf16.mxu0 %v5579_v30 }
 0x23d   : > { %5181 = vmatpush3.bf16.msra.mxu0 %v5580_v35 }
 0x23e   : > { %5182 = vmatprep.subr.bf16.mxu0 %v5581_v36 }
 0x241   : > { %5183 = vmatpush3.bf16.msra.mxu0 %v5582_v37 }
 0x242   : > { %5184 = vmatprep.subr.bf16.mxu0 %v5583_v38 }
 0x243   : > { %v5040_v55 = vpop.f32.mrf.mxu1 }
 0x245   : > { %5185 = vmatpush3.bf16.msra.mxu0 %v5584_v39  ;;  %v5041_v57 = vpop.f32.mrf.mxu1 }
 0x246   : > { %5186 = vmatprep.subr.bf16.mxu0 %v5585_v40  ;;  %v5042_v11 = vadd.f32 %v5041_v57, %v5040_v55  ;;  %v4815_v55 = vld [vmem:[%s6463_s6] ss:$0 sm:$0xff] }
 0x247   : > { %v5043_v59 = vpop.f32.mrf.mxu1 }
 0x248   : > { %v2398_v17 = vadd.f32 %v5042_v11, %v5020_v10 }
 0x249   : > { %5187 = vmatpush3.bf16.msra.mxu0 %v5586_v41  ;;  %v5044_v61 = vpop.f32.mrf.mxu1 }
 0x24a   : > { %5188 = vmatprep.subr.bf16.mxu0 %v5587_v42  ;;  %v5045_v18 = vadd.f32 %v5044_v61, %v5043_v59 }
 0x24c   : > { %v2401_v22 = vadd.f32 %v5045_v18, %v5023_v16 }
 0x24d   : > { %5189 = vmatpush3.bf16.msra.mxu0 %v5588_v34 }
 0x24e   : > { %5190 = vmatprep.subr.bf16.mxu0 %v5589_v43 }
 0x251   : > { %5191 = vmatpush3.bf16.msra.mxu0 %v5590_v44 }
 0x252   : > { %5192 = vmatprep.subr.bf16.mxu0 %v5591_v45 }
 0x255   : > { %5193 = vmatpush3.bf16.msra.mxu0 %v5592_v46 }
 0x258   : > { %2683 = vmatmul.mubr.bf16.vlgmr.msra.gmra.mxu0 %v1337_v48 }
 0x2b8   : > { %v5062_v60 = vpop.f32.mrf.mxu0  ;;  %v5084_v33 = vpop.f32.mrf.mxu1 }
 0x2ba   : > { %v5063_v62 = vpop.f32.mrf.mxu0  ;;  %v5085_v0 = vpop.f32.mrf.mxu1 }
 0x2bb   : > { %v5064_v13 = vadd.f32 %v5063_v62, %v5062_v60  ;;  %v5086_v23 = vadd.f32 %v5085_v0, %v5084_v33 }
 0x2bc   : > { %v5065_v63 = vpop.f32.mrf.mxu0  ;;  %v5087_v2 = vpop.f32.mrf.mxu1 }
 0x2bd   : > { %v2439_v19 = vadd.f32 %v5064_v13, %v2398_v17 }
 0x2be   : > { %v5066_v1 = vpop.f32.mrf.mxu0  ;;  %v5088_v4 = vpop.f32.mrf.mxu1 }
 0x2bf   : > { %v5067_v6 = vadd.f32 %v5066_v1, %v5065_v63  ;;  %v2480_v26 = vadd.f32 %v5086_v23, %v2439_v19  ;;  %v5089_v29 = vadd.f32 %v5088_v4, %v5087_v2  ;;  %v2859_v23 = vld [vmem:[#allocation8 + $0x380] sm:$0xff] }
 0x2c1   : > { %v2442_v27 = vadd.f32 %v5067_v6, %v2401_v22 }
 0x2c3   : > { %v2483_v35 = vadd.f32 %v5089_v29, %v2442_v27  ;;  %v2843_v29 = vld [vmem:[#allocation8 + $0x300] sm:$0xff] }
 0x2d8   : > { %v5106_v3 = vpop.f32.mrf.mxu0  ;;  %v5128_v7 = vpop.f32.mrf.mxu1 }
 0x2da   : > { %v5107_v5 = vpop.f32.mrf.mxu0  ;;  %v5129_v9 = vpop.f32.mrf.mxu1 }
 0x2db   : > { %v5108_v24 = vadd.f32 %v5107_v5, %v5106_v3  ;;  %v5130_v36 = vadd.f32 %v5129_v9, %v5128_v7 }
 0x2dc   : > { %v5109_v8 = vpop.f32.mrf.mxu0  ;;  %v5131_v14 = vpop.f32.mrf.mxu1 }
 0x2dd   : > { %v2521_v30 = vadd.f32 %v5108_v24, %v2480_v26  ;;  %v2867_v24 = vld [vmem:[#allocation8 + $0x3c0] sm:$0xff] }
 0x2de   : > { %v5110_v12 = vpop.f32.mrf.mxu0  ;;  %v5132_v20 = vpop.f32.mrf.mxu1  ;;  %v4928_v26 = vcombine.low %v2859_v23, %v2867_v24  ;;  %v4929_v27 = vcombine.high %v2859_v23, %v2867_v24 }
 0x2df   : > { %v5111_v31 = vadd.f32 %v5110_v12, %v5109_v8  ;;  %v2562_v39 = vadd.f32 %v5130_v36, %v2521_v30  ;;  %v5133_v42 = vadd.f32 %v5132_v20, %v5131_v14  ;;  %v2851_v30 = vld [vmem:[#allocation8 + $0x340] sm:$0xff]  ;;  %v2844_v36 = vld [vmem:[#allocation8 + $0x308] sm:$0xff] }
 0x2e0   : > { %3515 = vmatprep.subr.bf16.mxu1 %v4929_v27  ;;  %v2755_v27 = vld [vmem:[#allocation8 + $0x40] sm:$0xff] }
 0x2e1   : > { %v2524_v40 = vadd.f32 %v5111_v31, %v2483_v35  ;;  %v4913_v35 = vcombine.high %v2843_v29, %v2851_v30  ;;  %3516 = vmatpush1.bf16.msra.mxu1 %v4928_v26  ;;  %v2747_v26 = vld [vmem:[#allocation8] sm:$0xff] }
 0x2e3   : > { %v2565_v45 = vadd.f32 %v5133_v42, %v2524_v40  ;;  %v2835_v40 = vld [vmem:[#allocation8 + $0x2c0] sm:$0xff]  ;;  %v2836_v42 = vld [vmem:[#allocation8 + $0x2c8] sm:$0xff]  ;;  %3517 = vmatprep.subr.bf16.mxu1 %v4913_v35  ;;  %v6231_v35 = vld [vmem:[#allocation8 + $0x390] sm:$0xff] }
 0x2f8   : > { %v5150_v15 = vpop.f32.mrf.mxu0 }
 0x2f9   : > { %v5172_v25 = vpop.f32.mrf.mxu1 }
 0x2fa   : > { %v5151_v21 = vpop.f32.mrf.mxu0 }
 0x2fb   : > { %v5173_v32 = vpop.f32.mrf.mxu1  ;;  %v5152_v37 = vadd.f32 %v5151_v21, %v5150_v15 }
 0x2fc   : > { %v5153_v28 = vpop.f32.mrf.mxu0  ;;  %v5174_v46 = vadd.f32 %v5173_v32, %v5172_v25  ;;  %v2860_v25 = vld [vmem:[#allocation8 + $0x388] sm:$0xff] }
 0x2fd   : > { %v5175_v41 = vpop.f32.mrf.mxu1  ;;  %v2603_v34 = vadd.f32 %v5152_v37, %v2562_v39  ;;  %v2852_v37 = vld [vmem:[#allocation8 + $0x348] sm:$0xff] }
 0x2fe   : > { %v5154_v38 = vpop.f32.mrf.mxu0  ;;  %v4915_v39 = vcombine.high %v2844_v36, %v2852_v37 }
 0x2ff   : > { %v5155_v43 = vadd.f32 %v5154_v38, %v5153_v28  ;;  %v5176_v47 = vpop.f32.mrf.mxu1  ;;  %v2644_v49 = vadd.f32 %v5174_v46, %v2603_v34  ;;  %v2868_v28 = vld [vmem:[#allocation8 + $0x3c8] sm:$0xff]  ;;  %v2827_v38 = vld [vmem:[#allocation8 + $0x280] sm:$0xff]  ;;  %v4912_v34 = vcombine.low %v2843_v29, %v2851_v30  ;;  %v4817_v29 = vcombine.high %v2747_v26, %v2755_v27 }
 0x300   : > { %v5177_v57 = vadd.f32 %v5176_v47, %v5175_v41  ;;  %v4930_v31 = vcombine.low %v2860_v25, %v2868_v28  ;;  %v4931_v32 = vcombine.high %v2860_v25, %v2868_v28  ;;  %v2828_v41 = vld [vmem:[#allocation8 + $0x288] sm:$0xff]  ;;  %v4896_v46 = vcombine.low %v2827_v38, %v2835_v40 }
 0x301   : > { %v2606_v50 = vadd.f32 %v5155_v43, %v2565_v45  ;;  %v4914_v43 = vcombine.low %v2844_v36, %v2852_v37  ;;  %v4899_v45 = vcombine.high %v2828_v41, %v2836_v42  ;;  %3518 = vmatpush1.bf16.msra.mxu1 %v4912_v34  ;;  %v4898_v47 = vcombine.low %v2828_v41, %v2836_v42  ;;  %v2748_v28 = vld [vmem:[#allocation8 + $0x8] sm:$0xff]  ;;  %v6233_v36 = vld [vmem:[#allocation8 + $0x3d0] sm:$0xff]  ;;  %v6235_v37 = vld [vmem:[#allocation8 + $0x398] sm:$0xff] }
 0x302   : > { %3558 = vmatprep.subr.bf16.mxu0 %v4931_v32  ;;  %v2756_v30 = vld [vmem:[#allocation8 + $0x48] sm:$0xff]  ;;  %v5904_v41 = vmov 0  }
 0x303   : > { %v2647_v61 = vadd.f32 %v5177_v57, %v2606_v50  ;;  %3559 = vmatpush1.bf16.msra.mxu0 %v4930_v31  ;;  %v2812_v50 = vld [vmem:[#allocation8 + $0x208] sm:$0xff]  ;;  %v4818_v31 = vcombine.low %v2748_v28, %v2756_v30  ;;  %v4819_v32 = vcombine.high %v2748_v28, %v2756_v30  ;;  %3547 = vmatprep.mubr.bf16.mxu1 %v5904_v41  ;;  %v2765_v30 = vld [vmem:[#allocation8 + $0x90] sm:$0xff] }
 0x304   : > { %3560 = vmatprep.subr.bf16.mxu0 %v4915_v39  ;;  %v4933_v39 = vcombine.high %v6231_v35, %v6233_v36  ;;  %3590 = vmatprep.mubr.bf16.mxu0 %v5904_v41 }
 0x307   : > { %3561 = vmatpush1.bf16.msra.mxu0 %v4914_v43 }
 0x308   : > { %3562 = vmatprep.subr.bf16.mxu0 %v4899_v45 }
 0x30b   : > { %3563 = vmatpush1.bf16.msra.mxu0 %v4898_v47 }
 0x318   : > { %v5194_v44 = vpop.f32.mrf.mxu0 }
 0x31a   : > { %v5195_v48 = vpop.f32.mrf.mxu0 }
 0x31b   : > { %v5196_v51 = vadd.f32 %v5195_v48, %v5194_v44  ;;  %v4897_v44 = vcombine.high %v2827_v38, %v2835_v40  ;;  %v2811_v48 = vld [vmem:[#allocation8 + $0x200] sm:$0xff]  ;;  %v4932_v38 = vcombine.low %v6231_v35, %v6233_v36  ;;  %v2870_v40 = vld [vmem:[#allocation8 + $0x3d8] sm:$0xff] }
 0x31c   : > { %v5197_v53 = vpop.f32.mrf.mxu0  ;;  %v4934_v42 = vcombine.low %v6235_v37, %v2870_v40  ;;  %v4935_v34 = vcombine.high %v6235_v37, %v2870_v40  ;;  %v2757_v40 = vld [vmem:[#allocation8 + $0x50] sm:$0xff] }
 0x31d   : > { %v2685_v59 = vadd.f32 %v5196_v51, %v2644_v49  ;;  %3519 = vmatprep.subr.bf16.mxu1 %v4897_v44  ;;  %v2819_v49 = vld [vmem:[#allocation8 + $0x240] sm:$0xff] }
 0x31e   : > { %v5198_v60 = vpop.f32.mrf.mxu0  ;;  %3520 = vmatpush1.bf16.msra.mxu1 %v4896_v46  ;;  %v4881_v51 = vcombine.high %v2811_v48, %v2819_v49 }
 0x31f   : > { %v5199_v62 = vadd.f32 %v5198_v60, %v5197_v53  ;;  %v2698_v33 = vadd.f32 %v4815_v55, %v2685_v59  ;;  %v2820_v53 = vld [vmem:[#allocation8 + $0x248] sm:$0xff]  ;;  %v2795_v60 = vld [vmem:[#allocation8 + $0x180] sm:$0xff] }
 0x320   : > { %v4882_v57 = vcombine.low %v2812_v50, %v2820_v53  ;;  %v4883_v59 = vcombine.high %v2812_v50, %v2820_v53  ;;  %3521 = vmatprep.subr.bf16.mxu1 %v4881_v51  ;;  %v2853_v50 = vld [vmem:[#allocation8 + $0x350] sm:$0xff]  ;;  %v2846_v51 = vld [vmem:[#allocation8 + $0x318] sm:$0xff] }
 0x321   : > { %v2688_v63 = vadd.f32 %v5199_v62, %v2647_v61  ;;  %2700 = vrot.lane.b32.xlu0 %v2698_v33, %s5898_s9  ;;  %v2803_v61 = vld [vmem:[#allocation8 + $0x1c0] sm:$0xff]  ;;  %v2796_v62 = vld [vmem:[#allocation8 + $0x188] sm:$0xff]  ;;  %v2854_v53 = vld [vmem:[#allocation8 + $0x358] sm:$0xff] }
 0x322   : > { %3564 = vmatprep.subr.bf16.mxu0 %v4883_v59 }
 0x323   : > { %v2699_v0 = vadd.f32 %v4815_v55, %v2688_v63  ;;  %v4880_v55 = vcombine.low %v2811_v48, %v2819_v49  ;;  %3565 = vmatpush1.bf16.msra.mxu0 %v4882_v57  ;;  %v2804_v63 = vld [vmem:[#allocation8 + $0x1c8] sm:$0xff]  ;;  %v2845_v48 = vld [vmem:[#allocation8 + $0x310] sm:$0xff] }
 0x325   : > { %2702 = vrot.lane.b32.xlu1 %v2699_v0, %s5898_s9  ;;  %3522 = vmatpush1.bf16.msra.mxu1 %v4880_v55 }
 0x393   : > { %v2701_v1 = vpop.permute.xlu0 %2700 }
 0x394   : > { %v2704_v2 = vmax.f32 %v2698_v33, %v2701_v1  ;;  %v4866_v1 = vcombine.low %v2796_v62, %v2804_v63 }
 0x396   : > { %2706 = vrot.lane.b32.xlu0 %v2704_v2, %s5897_s30 }
 0x397   : > { %v2703_v3 = vpop.permute.xlu1 %2702 }
 0x398   : > { %v2705_v4 = vmax.f32 %v2699_v0, %v2703_v3  ;;  %v2779_v3 = vld [vmem:[#allocation8 + $0x100] sm:$0xff] }
 0x39a   : > { %2708 = vrot.lane.b32.xlu1 %v2705_v4, %s5897_s30 }
 0x408   : > { %v2707_v5 = vpop.permute.xlu0 %2706 }
 0x409   : > { %v2710_v7 = vmax.f32 %v2704_v2, %v2707_v5  ;;  %v4867_v2 = vcombine.high %v2796_v62, %v2804_v63  ;;  %v2780_v5 = vld [vmem:[#allocation8 + $0x108] sm:$0xff]  ;;  %v2829_v62 = vld [vmem:[#allocation8 + $0x290] sm:$0xff]  ;;  %v2830_v63 = vld [vmem:[#allocation8 + $0x298] sm:$0xff] }
 0x40b   : > { %2712 = vrot.lane.b32.xlu0 %v2710_v7, %s5900_s21  ;;  %3566 = vmatprep.subr.bf16.mxu0 %v4867_v2  ;;  %v4918_v2 = vcombine.low %v2846_v51, %v2854_v53 }
 0x40c   : > { %v2709_v8 = vpop.permute.xlu1 %2708  ;;  %3567 = vmatpush1.bf16.msra.mxu0 %v4866_v1  ;;  %v4916_v1 = vcombine.low %v2845_v48, %v2853_v50 }
 0x40d   : > { %v2711_v9 = vmax.f32 %v2705_v4, %v2709_v8  ;;  %v2787_v4 = vld [vmem:[#allocation8 + $0x140] sm:$0xff] }
 0x40e   : > { %v4849_v8 = vcombine.high %v2779_v3, %v2787_v4 }
 0x40f   : > { %2714 = vrot.lane.b32.xlu1 %v2711_v9, %s5900_s21 }
 0x47d   : > { %v2713_v10 = vpop.permute.xlu0 %2712 }
 0x47e   : > { %v2716_v11 = vmax.f32 %v2710_v7, %v2713_v10 }
 0x480   : > { %v2718_v12 = vsub.f32 %v2698_v33, %v2716_v11  ;;  %v4865_v33 = vcombine.high %v2795_v60, %v2803_v61  ;;  %v4848_v11 = vcombine.low %v2779_v3, %v2787_v4  ;;  %v2813_v3 = vld [vmem:[#allocation8 + $0x210] sm:$0xff] }
 0x481   : > { %v2715_v13 = vpop.permute.xlu1 %2714  ;;  %v2821_v4 = vld [vmem:[#allocation8 + $0x250] sm:$0xff] }
 0x482   : > { %v2720_v14 = vmul.f32 1.442695, %v2718_v12  ;;  %v2717_v15 = vmax.f32 %v2711_v9, %v2715_v13  ;;  %3523 = vmatprep.subr.bf16.mxu1 %v4865_v33  ;;  %v2788_v9 = vld [vmem:[#allocation8 + $0x148] sm:$0xff]  ;;  %v2837_v33 = vld [vmem:[#allocation8 + $0x2d0] sm:$0xff] }
 0x483   : > { %v4850_v12 = vcombine.low %v2780_v5, %v2788_v9  ;;  %v4851_v13 = vcombine.high %v2780_v5, %v2788_v9  ;;  %v2814_v5 = vld [vmem:[#allocation8 + $0x218] sm:$0xff] }
 0x484   : > { %5665 = vpow2.f32 %v2720_v14  ;;  %v2719_v16 = vsub.f32 %v2699_v0, %v2717_v15  ;;  %v4864_v0 = vcombine.low %v2795_v60, %v2803_v61  ;;  %v2763_v14 = vld [vmem:[#allocation8 + $0x80] sm:$0xff]  ;;  %v4917_v60 = vcombine.high %v2845_v48, %v2853_v50  ;;  %v2872_v50 = vld [vmem:[#allocation8 + $0x3e8] sm:$0xff] }
 0x485   : > { %3568 = vmatprep.subr.bf16.mxu0 %v4851_v13  ;;  %v2771_v15 = vld [vmem:[#allocation8 + $0xc0] sm:$0xff]  ;;  %v4919_v61 = vcombine.high %v2846_v51, %v2854_v53  ;;  %v2805_v13 = vld [vmem:[#allocation8 + $0x1d0] sm:$0xff] }
 0x486   : > { %v2722_v17 = vmul.f32 1.442695, %v2719_v16  ;;  %3524 = vmatpush1.bf16.msra.mxu1 %v4864_v0  ;;  %v2764_v16 = vld [vmem:[#allocation8 + $0x88] sm:$0xff]  ;;  %3569 = vmatpush1.bf16.msra.mxu0 %v4850_v12  ;;  %v2838_v0 = vld [vmem:[#allocation8 + $0x2d8] sm:$0xff]  ;;  %v2797_v12 = vld [vmem:[#allocation8 + $0x190] sm:$0xff] }
 0x487   : > { %3525 = vmatprep.subr.bf16.mxu1 %v4849_v8  ;;  %v4900_v8 = vcombine.low %v2829_v62, %v2837_v33  ;;  %v4902_v9 = vcombine.low %v2830_v63, %v2838_v0  ;;  %v2871_v48 = vld [vmem:[#allocation8 + $0x3e0] sm:$0xff] }
 0x488   : > { %5667 = vpow2.f32 %v2722_v17 }
 0x48a   : > { %3526 = vmatpush1.bf16.msra.mxu1 %v4848_v11 }
 0x491   : > { %v6197_v18 = vpop.eup %5665 }
 0x492   : > { %2724 = vrot.lane.b32.xlu0 %v6197_v18, %s5898_s9 }
 0x495   : > { %v6201_v19 = vpop.eup %5667 }
 0x496   : > { %2726 = vrot.lane.b32.xlu1 %v6201_v19, %s5898_s9 }
 0x504   : > { %v2725_v6 = vpop.permute.xlu0 %2724 }
 0x505   : > { %v6206_v20 = vadd.f32 %v6197_v18, %v2725_v6  ;;  %v4833_v6 = vcombine.high %v2763_v14, %v2771_v15 }
 0x507   : > { %2730 = vrot.lane.b32.xlu0 %v6206_v20, %s5897_s30  ;;  %3527 = vmatprep.subr.bf16.mxu1 %v4833_v6  ;;  %v4869_v6 = vcombine.high %v2797_v12, %v2805_v13 }
 0x508   : > { %v2727_v21 = vpop.permute.xlu1 %2726 }
 0x509   : > { %v6211_v22 = vadd.f32 %v6201_v19, %v2727_v21  ;;  %v2772_v21 = vld [vmem:[#allocation8 + $0xc8] sm:$0xff] }
 0x50a   : > { %v4834_v24 = vcombine.low %v2764_v16, %v2772_v21  ;;  %v4835_v25 = vcombine.high %v2764_v16, %v2772_v21  ;;  %v4884_v16 = vcombine.low %v2813_v3, %v2821_v4 }
 0x50b   : > { %2732 = vrot.lane.b32.xlu1 %v6211_v22, %s5897_s30 }
 0x50c   : > { %3570 = vmatprep.subr.bf16.mxu0 %v4835_v25  ;;  %v2790_v25 = vld [vmem:[#allocation8 + $0x158] sm:$0xff] }
 0x50d   : > { %3571 = vmatpush1.bf16.msra.mxu0 %v4834_v24  ;;  %v2782_v24 = vld [vmem:[#allocation8 + $0x118] sm:$0xff] }
 0x50e   : > { %3572 = vmatprep.subr.bf16.mxu0 %v4819_v32  ;;  %v2774_v32 = vld [vmem:[#allocation8 + $0xd8] sm:$0xff]  ;;  %v4854_v36 = vcombine.low %v2782_v24, %v2790_v25 }
 0x511   : > { %3573 = vmatpush1.bf16.msra.mxu0 %v4818_v31  ;;  %v2766_v31 = vld [vmem:[#allocation8 + $0x98] sm:$0xff] }
 0x512   : > { %3644 = vmatprep.subr.bf16.mxu0 %v4935_v34  ;;  %v2758_v34 = vld [vmem:[#allocation8 + $0x58] sm:$0xff] }
 0x579   : > { %v2731_v7 = vpop.permute.xlu0 %2730 }
 0x57a   : > { %v6216_v10 = vadd.f32 %v2731_v7, %v6206_v20  ;;  %v4832_v20 = vcombine.low %v2763_v14, %v2771_v15  ;;  %v2822_v7 = vld [vmem:[#allocation8 + $0x258] sm:$0xff] }
 0x57b   : > { %v4887_v11 = vcombine.high %v2814_v5, %v2822_v7  ;;  %v2798_v14 = vld [vmem:[#allocation8 + $0x198] sm:$0xff] }
 0x57c   : > { %2736 = vrot.lane.b32.xlu0 %v6216_v10, %s5900_s21  ;;  %3528 = vmatpush1.bf16.msra.mxu1 %v4832_v20  ;;  %v2806_v15 = vld [vmem:[#allocation8 + $0x1d8] sm:$0xff]  ;;  %v2789_v20 = vld [vmem:[#allocation8 + $0x150] sm:$0xff] }
 0x57d   : > { %v2733_v17 = vpop.permute.xlu1 %2732  ;;  %3529 = vmatprep.subr.bf16.mxu1 %v4817_v29  ;;  %v4871_v21 = vcombine.high %v2798_v14, %v2806_v15  ;;  %v4855_v29 = vcombine.high %v2782_v24, %v2790_v25 }
 0x57e   : > { %v6221_v23 = vadd.f32 %v2733_v17, %v6211_v22  ;;  %v4816_v22 = vcombine.low %v2747_v26, %v2755_v27  ;;  %v4886_v17 = vcombine.low %v2814_v5, %v2822_v7  ;;  %v4868_v26 = vcombine.low %v2797_v12, %v2805_v13  ;;  %v2816_v12 = vld [vmem:[#allocation8 + $0x228] sm:$0xff] }
 0x57f   : > { %v4870_v27 = vcombine.low %v2798_v14, %v2806_v15  ;;  %v2824_v13 = vld [vmem:[#allocation8 + $0x268] sm:$0xff] }
 0x580   : > { %2738 = vrot.lane.b32.xlu1 %v6221_v23, %s5900_s21  ;;  %3867 = vrot.lane.b32.xlu0 %v6180_v52, %s5898_s9  ;;  %v4890_v25 = vcombine.low %v2816_v12, %v2824_v13 }
 0x581   : > { %3530 = vmatpush1.bf16.msra.mxu1 %v4816_v22  ;;  %v2773_v22 = vld [vmem:[#allocation8 + $0xd0] sm:$0xff] }
 0x582   : > { %3601 = vmatprep.subr.bf16.mxu1 %v4933_v39  ;;  %v4837_v37 = vcombine.high %v2765_v30, %v2773_v22  ;;  %v2749_v39 = vld [vmem:[#allocation8 + $0x10] sm:$0xff] }
 0x583   : > { %v4820_v51 = vcombine.low %v2749_v39, %v2757_v40 }
 0x584   : > { %3869 = vrot.lane.b32.xlu1 %v6182_v54, %s5898_s9  ;;  %3871 = vrot.lane.b32.xlu0 %v6184_v56, %s5898_s9 }
 0x588   : > { %3873 = vrot.lane.b32.xlu1 %v6186_v58, %s5898_s9  ;;  %3891 = vrot.lane.b32.xlu0 %v6180_v52, %s5897_s30 }
 0x58c   : > { %3893 = vrot.lane.b32.xlu1 %v6182_v54, %s5897_s30  ;;  %3895 = vrot.lane.b32.xlu0 %v6184_v56, %s5897_s30 }
 0x590   : > { %3897 = vrot.lane.b32.xlu1 %v6186_v58, %s5897_s30  ;;  %3915 = vrot.lane.b32.xlu0 %v6180_v52, %s5899_s19  ;;  %s4446_s30 = sshll.u32 %s355_s14, 4  ;;  %s6407_s30 = int_to_ptr.vmem [resolvable:$true] %s4446_s30 }
 0x594   : > { %3917 = vrot.lane.b32.xlu1 %v6182_v54, %s5899_s19  ;;  %3919 = vrot.lane.b32.xlu0 %v6184_v56, %s5899_s19 }
 0x598   : > { %3921 = vrot.lane.b32.xlu1 %v6186_v58, %s5899_s19  ;;  %3939 = vrot.lane.b32.xlu0 %v6180_v52, %s5900_s21  ;;  %s5001_s19 = sshll.u32 %s5968_s28, 9  ;;  %s5809_s28 = scalar_lea.vmem %s6407_s30, 512 }
 0x599   : > { %p5810_p12 = scmp.ne.s32.totalorder %s6407_s30, %s5809_s28 }
 0x59b   : > { %p5811_p9 = pnand %p5810_p12, %p6484_p7 }
 0x59c   : > { %3941 = vrot.lane.b32.xlu1 %v6182_v54, %s5900_s21  ;;  %3943 = vrot.lane.b32.xlu0 %v6184_v56, %s5900_s21 }
 0x59d   : > { %p5812_p13 = pneg %p5811_p9 }
 0x5a0   : > { %3945 = vrot.lane.b32.xlu1 %v6186_v58, %s5900_s21  ;;  %3963 = vrot.lane.b32.xlu0 %v6180_v52, %s5901_s22 }
 0x5a4   : > { %3965 = vrot.lane.b32.xlu1 %v6182_v54, %s5901_s22  ;;  %3967 = vrot.lane.b32.xlu0 %v6184_v56, %s5901_s22 }
 0x5a8   : > { %3969 = vrot.lane.b32.xlu1 %v6186_v58, %s5901_s22  ;;  %3987 = vrot.lane.b32.xlu0 %v6180_v52, %s5902_s23  ;;  %s6413_s22 = scalar_lea.hbm %s6464_s7, %s5001_s19 }
 0x5ac   : > { %3989 = vrot.lane.b32.xlu1 %v6182_v54, %s5902_s23  ;;  %3991 = vrot.lane.b32.xlu0 %v6184_v56, %s5902_s23 }
 0x5b0   : > { %3993 = vrot.lane.b32.xlu1 %v6186_v58, %s5902_s23  ;;  %4011 = vrot.lane.b32.xlu0 %v6180_v52, %s5903_s12  ;;  %s4432_s23 = scalar_lea.sflag [#allocation4], %s6090_s15 }
 0x5b4   : > { %4013 = vrot.lane.b32.xlu1 %v6182_v54, %s5903_s12  ;;  %4015 = vrot.lane.b32.xlu0 %v6184_v56, %s5903_s12 }
 0x5b8   : > { %4017 = vrot.lane.b32.xlu1 %v6186_v58, %s5903_s12  ;;  %s5905_s12 = smov [#allocation11]  }
 0x5b9   : > { %s5813_s20 = sshll.u32 %s5905_s12, 4  ;;  %s5814_s20 = int_to_ptr.vmem [resolvable:$false] %s5813_s20 }
 0x5ba   : > { %s5815_s11 = scalar_lea.vmem %s5814_s20, 1024  ;;  %p5816_p0 = scmp.lt.s32.totalorder %s6407_s30, %s5814_s20 }
 0x5bb   : > { %p5817_p5 = scmp.lt.s32.totalorder %s5815_s11, %s5809_s28 }
 0x5bd   : > { %p5818_p1 = por %p5817_p5, %p5816_p0 }
 0x5bf   : > { %p5819_p3 = pnand %p5818_p1, %p5812_p13 }
 0x5ee   : > { %v2737_v43 = vpop.permute.xlu0 %2736 }
 0x5ef   : > { %v2740_v44 = vadd.f32 %v2737_v43, %v6216_v10  ;;  %v4885_v10 = vcombine.high %v2813_v3, %v2821_v4  ;;  %v4836_v43 = vcombine.low %v2765_v30, %v2773_v22  ;;  %v2832_v3 = vld [vmem:[#allocation8 + $0x2a8] sm:$0xff] }
 0x5f0   : > { %v2840_v4 = vld [vmem:[#allocation8 + $0x2e8] sm:$0xff] }
 0x5f1   : > { %5669 = vrcp.f32 %v2740_v44  ;;  %v4838_v44 = vcombine.low %v2766_v31, %v2774_v32  ;;  %v4906_v15 = vcombine.low %v2832_v3, %v2840_v4  ;;  %v2784_v30 = vld [vmem:[#allocation8 + $0x128] sm:$0xff] }
 0x5f2   : > { %v2739_v45 = vpop.permute.xlu1 %2738  ;;  %v2792_v22 = vld [vmem:[#allocation8 + $0x168] sm:$0xff] }
 0x5f3   : > { %v2741_v46 = vadd.f32 %v2739_v45, %v6221_v23  ;;  %v2781_v23 = vld [vmem:[#allocation8 + $0x110] sm:$0xff]  ;;  %v4821_v45 = vcombine.high %v2749_v39, %v2757_v40  ;;  %v2768_v39 = vld [vmem:[#allocation8 + $0xa8] sm:$0xff] }
 0x5f4   : > { %v4853_v28 = vcombine.high %v2781_v23, %v2789_v20  ;;  %v4852_v35 = vcombine.low %v2781_v23, %v2789_v20  ;;  %v2800_v23 = vld [vmem:[#allocation8 + $0x1a8] sm:$0xff] }
 0x5f5   : > { %5671 = vrcp.f32 %v2741_v46  ;;  %v2808_v20 = vld [vmem:[#allocation8 + $0x1e8] sm:$0xff] }
 0x5f6   : > { %v2776_v40 = vld [vmem:[#allocation8 + $0xe8] sm:$0xff] }
 0x5fe   : > { %v5670_v47 = vpop.eup %5669 }
 0x5ff   : > { %v2744_v55 = vmul.f32 %v5670_v47, %v6197_v18  ;;  %v4901_v18 = vcombine.high %v2829_v62, %v2837_v33  ;;  %v2863_v47 = vld [vmem:[#allocation8 + $0x3a0] sm:$0xff]  ;;  %v2848_v62 = vld [vmem:[#allocation8 + $0x328] sm:$0xff] }
 0x600   : > { %v2856_v33 = vld [vmem:[#allocation8 + $0x368] sm:$0xff] }
 0x601   : > { %v4922_v7 = vcombine.low %v2848_v62, %v2856_v33 }
 0x602   : > { %v5672_v49 = vpop.eup %5671 }
 0x603   : > { %v2745_v57 = vmul.f32 %v5672_v49, %v6201_v19  ;;  %v4903_v19 = vcombine.high %v2830_v63, %v2838_v0  ;;  %v2864_v49 = vld [vmem:[#allocation8 + $0x3a8] sm:$0xff]  ;;  %v4936_v63 = vcombine.low %v2863_v47, %v2871_v48 }
 0x604   : > { %v4938_v0 = vcombine.low %v2864_v49, %v2872_v50 }
 0x605   : > { %v6299_v59 = vpack.c.bf16 %v2745_v57, %v2744_v55  ;;  %v4937_v55 = vcombine.high %v2863_v47, %v2871_v48  ;;  %v4939_v57 = vcombine.high %v2864_v49, %v2872_v50  ;;  %v2752_v47 = vld [vmem:[#allocation8 + $0x28] sm:$0xff]  ;;  %v4842_v50 = vcombine.low %v2768_v39, %v2776_v40 }
 0x606   : > { %v2760_v48 = vld [vmem:[#allocation8 + $0x68] sm:$0xff] }
 0x607   : > { %3548 = vmatmul.mubr.bf16.vlgmr.msra.gmra.mxu1 %v6299_v59  ;;  %3591 = vmatmul.mubr.bf16.vlgmr.msra.gmra.mxu0 %v6299_v59 }
 0x608   : > { %3602 = vmatpush1.bf16.msra.mxu1 %v4932_v38  ;;  %3645 = vmatpush1.bf16.msra.mxu0 %v4934_v42  ;;  %v4839_v38 = vcombine.high %v2766_v31, %v2774_v32  ;;  %v2750_v42 = vld [vmem:[#allocation8 + $0x18] sm:$0xff]  ;;  %v4874_v32 = vcombine.low %v2800_v23, %v2808_v20 }
 0x609   : > { %3603 = vmatprep.subr.bf16.mxu1 %v4917_v60  ;;  %3646 = vmatprep.subr.bf16.mxu0 %v4919_v61  ;;  %v4823_v46 = vcombine.high %v2750_v42, %v2758_v34  ;;  %v4822_v53 = vcombine.low %v2750_v42, %v2758_v34  ;;  %v2847_v60 = vld [vmem:[#allocation8 + $0x320] sm:$0xff]  ;;  %v4858_v34 = vcombine.low %v2784_v30, %v2792_v22 }
 0x60a   : > { %3633 = vmatprep.mubr.bf16.mxu1 %v5904_v41  ;;  %3676 = vmatprep.mubr.bf16.mxu0 %v5904_v41  ;;  %v2855_v61 = vld [vmem:[#allocation8 + $0x360] sm:$0xff] }
 0x60b   : > { %v4920_v5 = vcombine.low %v2847_v60, %v2855_v61 }
 0x60c   : > { %3604 = vmatpush1.bf16.msra.mxu1 %v4916_v1  ;;  %3647 = vmatpush1.bf16.msra.mxu0 %v4918_v2  ;;  %v4921_v1 = vcombine.high %v2847_v60, %v2855_v61  ;;  %v4923_v2 = vcombine.high %v2848_v62, %v2856_v33  ;;  %v2866_v60 = vld [vmem:[#allocation8 + $0x3b8] sm:$0xff]  ;;  %v4826_v33 = vcombine.low %v2752_v47, %v2760_v48 }
 0x60d   : > { %3605 = vmatprep.subr.bf16.mxu1 %v4901_v18  ;;  %3648 = vmatprep.subr.bf16.mxu0 %v4903_v19  ;;  %v2831_v18 = vld [vmem:[#allocation8 + $0x2a0] sm:$0xff]  ;;  %v2874_v61 = vld [vmem:[#allocation8 + $0x3f8] sm:$0xff] }
 0x60e   : > { %v2839_v19 = vld [vmem:[#allocation8 + $0x2e0] sm:$0xff] }
 0x60f   : > { %v4904_v14 = vcombine.low %v2831_v18, %v2839_v19 }
 0x610   : > { %3606 = vmatpush1.bf16.msra.mxu1 %v4900_v8  ;;  %3649 = vmatpush1.bf16.msra.mxu0 %v4902_v9  ;;  %v4905_v8 = vcombine.high %v2831_v18, %v2839_v19  ;;  %v4907_v9 = vcombine.high %v2832_v3, %v2840_v4  ;;  %v2850_v18 = vld [vmem:[#allocation8 + $0x338] sm:$0xff]  ;;  %v4942_v4 = vcombine.low %v2866_v60, %v2874_v61 }
 0x611   : > { %3607 = vmatprep.subr.bf16.mxu1 %v4885_v10  ;;  %3650 = vmatprep.subr.bf16.mxu0 %v4887_v11  ;;  %v2815_v10 = vld [vmem:[#allocation8 + $0x220] sm:$0xff]  ;;  %v2858_v19 = vld [vmem:[#allocation8 + $0x378] sm:$0xff] }
 0x612   : > { %v2823_v11 = vld [vmem:[#allocation8 + $0x260] sm:$0xff] }
 0x613   : > { %v4888_v24 = vcombine.low %v2815_v10, %v2823_v11 }
 0x614   : > { %3608 = vmatpush1.bf16.msra.mxu1 %v4884_v16  ;;  %3651 = vmatpush1.bf16.msra.mxu0 %v4886_v17  ;;  %v4889_v16 = vcombine.high %v2815_v10, %v2823_v11  ;;  %v4891_v17 = vcombine.high %v2816_v12, %v2824_v13  ;;  %v2834_v10 = vld [vmem:[#allocation8 + $0x2b8] sm:$0xff]  ;;  %v4926_v13 = vcombine.low %v2850_v18, %v2858_v19 }
 0x615   : > { %3609 = vmatprep.subr.bf16.mxu1 %v4869_v6  ;;  %3652 = vmatprep.subr.bf16.mxu0 %v4871_v21  ;;  %v2799_v6 = vld [vmem:[#allocation8 + $0x1a0] sm:$0xff]  ;;  %v2842_v11 = vld [vmem:[#allocation8 + $0x2f8] sm:$0xff] }
 0x616   : > { %v2807_v21 = vld [vmem:[#allocation8 + $0x1e0] sm:$0xff] }
 0x617   : > { %v4872_v31 = vcombine.low %v2799_v6, %v2807_v21 }
 0x618   : > { %3610 = vmatpush1.bf16.msra.mxu1 %v4868_v26  ;;  %3653 = vmatpush1.bf16.msra.mxu0 %v4870_v27  ;;  %v4873_v26 = vcombine.high %v2799_v6, %v2807_v21  ;;  %v4875_v27 = vcombine.high %v2800_v23, %v2808_v20  ;;  %v2818_v6 = vld [vmem:[#allocation8 + $0x238] sm:$0xff]  ;;  %v4910_v20 = vcombine.low %v2834_v10, %v2842_v11 }
 0x619   : > { %3611 = vmatprep.subr.bf16.mxu1 %v4853_v28  ;;  %3654 = vmatprep.subr.bf16.mxu0 %v4855_v29  ;;  %v2783_v28 = vld [vmem:[#allocation8 + $0x120] sm:$0xff]  ;;  %v2826_v21 = vld [vmem:[#allocation8 + $0x278] sm:$0xff] }
 0x61a   : > { %v2791_v29 = vld [vmem:[#allocation8 + $0x160] sm:$0xff] }
 0x61b   : > { %v4856_v42 = vcombine.low %v2783_v28, %v2791_v29 }
 0x61c   : > { %3612 = vmatpush1.bf16.msra.mxu1 %v4852_v35  ;;  %3655 = vmatpush1.bf16.msra.mxu0 %v4854_v36  ;;  %v4857_v35 = vcombine.high %v2783_v28, %v2791_v29  ;;  %v4859_v36 = vcombine.high %v2784_v30, %v2792_v22  ;;  %v2802_v28 = vld [vmem:[#allocation8 + $0x1b8] sm:$0xff]  ;;  %v4894_v22 = vcombine.low %v2818_v6, %v2826_v21 }
 0x61d   : > { %3613 = vmatprep.subr.bf16.mxu1 %v4837_v37  ;;  %3656 = vmatprep.subr.bf16.mxu0 %v4839_v38  ;;  %v2767_v37 = vld [vmem:[#allocation8 + $0xa0] sm:$0xff]  ;;  %v2810_v29 = vld [vmem:[#allocation8 + $0x1f8] sm:$0xff] }
 0x61e   : > { %v2775_v38 = vld [vmem:[#allocation8 + $0xe0] sm:$0xff] }
 0x61f   : > { %v4840_v49 = vcombine.low %v2767_v37, %v2775_v38 }
 0x620   : > { %3614 = vmatpush1.bf16.msra.mxu1 %v4836_v43  ;;  %3657 = vmatpush1.bf16.msra.mxu0 %v4838_v44  ;;  %v4841_v43 = vcombine.high %v2767_v37, %v2775_v38  ;;  %v4843_v44 = vcombine.high %v2768_v39, %v2776_v40  ;;  %v2786_v37 = vld [vmem:[#allocation8 + $0x138] sm:$0xff]  ;;  %v4878_v40 = vcombine.low %v2802_v28, %v2810_v29 }
 0x621   : > { %3615 = vmatprep.subr.bf16.mxu1 %v4821_v45  ;;  %3658 = vmatprep.subr.bf16.mxu0 %v4823_v46  ;;  %v2751_v45 = vld [vmem:[#allocation8 + $0x20] sm:$0xff]  ;;  %v2794_v38 = vld [vmem:[#allocation8 + $0x178] sm:$0xff] }
 0x622   : > { %v2759_v46 = vld [vmem:[#allocation8 + $0x60] sm:$0xff] }
 0x623   : > { %v4824_v62 = vcombine.low %v2751_v45, %v2759_v46 }
 0x624   : > { %3616 = vmatpush1.bf16.msra.mxu1 %v4820_v51  ;;  %3659 = vmatpush1.bf16.msra.mxu0 %v4822_v53  ;;  %v4825_v51 = vcombine.high %v2751_v45, %v2759_v46  ;;  %v4827_v53 = vcombine.high %v2752_v47, %v2760_v48  ;;  %v2770_v45 = vld [vmem:[#allocation8 + $0xb8] sm:$0xff]  ;;  %v4862_v48 = vcombine.low %v2786_v37, %v2794_v38 }
 0x625   : > { %3687 = vmatprep.subr.bf16.mxu1 %v4937_v55  ;;  %3730 = vmatprep.subr.bf16.mxu0 %v4939_v57  ;;  %v2865_v55 = vld [vmem:[#allocation8 + $0x3b0] sm:$0xff]  ;;  %v2778_v46 = vld [vmem:[#allocation8 + $0xf8] sm:$0xff] }
 0x626   : > { %v2873_v57 = vld [vmem:[#allocation8 + $0x3f0] sm:$0xff] }
 0x627   : > { %3634 = vmatmul.mubr.bf16.vlgmr.msra.gmra.mxu1 %v6299_v59  ;;  %3677 = vmatmul.mubr.bf16.vlgmr.msra.gmra.mxu0 %v6299_v59  ;;  %v4940_v3 = vcombine.low %v2865_v55, %v2873_v57 }
 0x628   : > { %3688 = vmatpush1.bf16.msra.mxu1 %v4936_v63  ;;  %3731 = vmatpush1.bf16.msra.mxu0 %v4938_v0  ;;  %v4941_v63 = vcombine.high %v2865_v55, %v2873_v57  ;;  %v4943_v0 = vcombine.high %v2866_v60, %v2874_v61  ;;  %v2754_v55 = vld [vmem:[#allocation8 + $0x38] sm:$0xff]  ;;  %v4846_v61 = vcombine.low %v2770_v45, %v2778_v46 }
 0x629   : > { %3689 = vmatprep.subr.bf16.mxu1 %v4921_v1  ;;  %3732 = vmatprep.subr.bf16.mxu0 %v4923_v2  ;;  %v2849_v1 = vld [vmem:[#allocation8 + $0x330] sm:$0xff]  ;;  %v2762_v57 = vld [vmem:[#allocation8 + $0x78] sm:$0xff] }
 0x62a   : > { %3719 = vmatprep.mubr.bf16.mxu1 %v5904_v41  ;;  %3762 = vmatprep.mubr.bf16.mxu0 %v5904_v41  ;;  %v2857_v2 = vld [vmem:[#allocation8 + $0x370] sm:$0xff] }
 0x62b   : > { %v4924_v12 = vcombine.low %v2849_v1, %v2857_v2 }
 0x62c   : > { %3690 = vmatpush1.bf16.msra.mxu1 %v4920_v5  ;;  %3733 = vmatpush1.bf16.msra.mxu0 %v4922_v7  ;;  %v4925_v5 = vcombine.high %v2849_v1, %v2857_v2  ;;  %v4927_v7 = vcombine.high %v2850_v18, %v2858_v19  ;;  %v5595_v1 = vld [vmem:[#allocation10 + $0x174] ss:$8 sps:$4 sm:$0xff]   ;;  %v5593_v2 = vld [vmem:[#allocation10 + $0x170] ss:$8 sps:$4 sm:$0xff]   ;;  %v5598_v18 = vld [vmem:[#allocation10 + $0x164] ss:$8 sps:$4 sm:$0xff]  }
 0x62d   : > { %3691 = vmatprep.subr.bf16.mxu1 %v4905_v8  ;;  %3734 = vmatprep.subr.bf16.mxu0 %v4907_v9  ;;  %v2833_v8 = vld [vmem:[#allocation8 + $0x2b0] sm:$0xff]  ;;  %v5596_v19 = vld [vmem:[#allocation10 + $0x160] ss:$8 sps:$4 sm:$0xff]  }
 0x62e   : > { %v2841_v9 = vld [vmem:[#allocation8 + $0x2f0] sm:$0xff] }
 0x62f   : > { %v4908_v23 = vcombine.low %v2833_v8, %v2841_v9 }
 0x630   : > { %3692 = vmatpush1.bf16.msra.mxu1 %v4904_v14  ;;  %3735 = vmatpush1.bf16.msra.mxu0 %v4906_v15  ;;  %v4909_v14 = vcombine.high %v2833_v8, %v2841_v9  ;;  %v4911_v15 = vcombine.high %v2834_v10, %v2842_v11  ;;  %v5607_v8 = vld [vmem:[#allocation10 + $0x134] ss:$8 sps:$4 sm:$0xff]   ;;  %v5617_v9 = vld [vmem:[#allocation10 + $0x70] ss:$8 sps:$4 sm:$0xff]   ;;  %v5622_v11 = vld [vmem:[#allocation10 + $0x64] ss:$8 sps:$4 sm:$0xff]  }
 0x631   : > { %3693 = vmatprep.subr.bf16.mxu1 %v4889_v16  ;;  %3736 = vmatprep.subr.bf16.mxu0 %v4891_v17  ;;  %v2817_v16 = vld [vmem:[#allocation8 + $0x230] sm:$0xff] }
 0x632   : > { %v2825_v17 = vld [vmem:[#allocation8 + $0x270] sm:$0xff] }
 0x633   : > { %v4892_v30 = vcombine.low %v2817_v16, %v2825_v17  ;;  %v5619_v10 = vld [vmem:[#allocation10 + $0x74] ss:$8 sps:$4 sm:$0xff]  }
 0x634   : > { %3694 = vmatpush1.bf16.msra.mxu1 %v4888_v24  ;;  %3737 = vmatpush1.bf16.msra.mxu0 %v4890_v25  ;;  %v4893_v24 = vcombine.high %v2817_v16, %v2825_v17  ;;  %v4895_v25 = vcombine.high %v2818_v6, %v2826_v21  ;;  %v5613_v16 = vld [vmem:[#allocation10 + $0x114] ss:$8 sps:$4 sm:$0xff]   ;;  %v5623_v17 = vld [vmem:[#allocation10 + $0x50] ss:$8 sps:$4 sm:$0xff]   ;;  %v5628_v6 = vld [vmem:[#allocation10 + $0x44] ss:$8 sps:$4 sm:$0xff]  }
 0x635   : > { %3695 = vmatprep.subr.bf16.mxu1 %v4873_v26  ;;  %3738 = vmatprep.subr.bf16.mxu0 %v4875_v27  ;;  %v2801_v26 = vld [vmem:[#allocation8 + $0x1b0] sm:$0xff] }
 0x636   : > { %v2809_v27 = vld [vmem:[#allocation8 + $0x1f0] sm:$0xff] }
 0x637   : > { %v4876_v39 = vcombine.low %v2801_v26, %v2809_v27  ;;  %v5611_v21 = vld [vmem:[#allocation10 + $0x110] ss:$8 sps:$4 sm:$0xff]  }
 0x638   : > { %3696 = vmatpush1.bf16.msra.mxu1 %v4872_v31  ;;  %3739 = vmatpush1.bf16.msra.mxu0 %v4874_v32  ;;  %v4877_v31 = vcombine.high %v2801_v26, %v2809_v27  ;;  %v4879_v32 = vcombine.high %v2802_v28, %v2810_v29  ;;  %v5629_v26 = vld [vmem:[#allocation10 + $0x30] ss:$8 sps:$4 sm:$0xff]   ;;  %v5634_v27 = vld [vmem:[#allocation10 + $0x24] ss:$8 sps:$4 sm:$0xff]   ;;  %v5632_v28 = vld [vmem:[#allocation10 + $0x20] ss:$8 sps:$4 sm:$0xff]  }
 0x639   : > { %3697 = vmatprep.subr.bf16.mxu1 %v4857_v35  ;;  %3740 = vmatprep.subr.bf16.mxu0 %v4859_v36  ;;  %v2785_v35 = vld [vmem:[#allocation8 + $0x130] sm:$0xff] }
 0x63a   : > { %v2793_v36 = vld [vmem:[#allocation8 + $0x170] sm:$0xff] }
 0x63b   : > { %v4860_v47 = vcombine.low %v2785_v35, %v2793_v36  ;;  %v5637_v29 = vld [vmem:[#allocation10 + $0x14] ss:$8 sps:$4 sm:$0xff]  }
 0x63c   : > { %3698 = vmatpush1.bf16.msra.mxu1 %v4856_v42  ;;  %3741 = vmatpush1.bf16.msra.mxu0 %v4858_v34  ;;  %v4861_v42 = vcombine.high %v2785_v35, %v2793_v36  ;;  %v4863_v34 = vcombine.high %v2786_v37, %v2794_v38  ;;  %v5641_v35 = vld [vmem:[#allocation10 + $0xf0] ss:$8 sps:$4 sm:$0xff]   ;;  %v5646_v36 = vld [vmem:[#allocation10 + $0xe4] ss:$8 sps:$4 sm:$0xff]   ;;  %v5649_v37 = vld [vmem:[#allocation10 + $0xd4] ss:$8 sps:$4 sm:$0xff]  }
 0x63d   : > { %3699 = vmatprep.subr.bf16.mxu1 %v4841_v43  ;;  %3742 = vmatprep.subr.bf16.mxu0 %v4843_v44  ;;  %v2769_v43 = vld [vmem:[#allocation8 + $0xb0] sm:$0xff] }
 0x63e   : > { %v2777_v44 = vld [vmem:[#allocation8 + $0xf0] sm:$0xff] }
 0x63f   : > { %v4844_v60 = vcombine.low %v2769_v43, %v2777_v44  ;;  %v5647_v38 = vld [vmem:[#allocation10 + $0xd0] ss:$8 sps:$4 sm:$0xff]  }
 0x640   : > { %3700 = vmatpush1.bf16.msra.mxu1 %v4840_v49  ;;  %3743 = vmatpush1.bf16.msra.mxu0 %v4842_v50  ;;  %v4845_v49 = vcombine.high %v2769_v43, %v2777_v44  ;;  %v4847_v50 = vcombine.high %v2770_v45, %v2778_v46  ;;  %v5658_v43 = vld [vmem:[#allocation10 + $0xa4] ss:$8 sps:$4 sm:$0xff]   ;;  %v5656_v44 = vld [vmem:[#allocation10 + $0xa0] ss:$8 sps:$4 sm:$0xff]   ;;  %v5661_v45 = vld [vmem:[#allocation10 + $0x94] ss:$8 sps:$4 sm:$0xff]  }
 0x641   : > { %3701 = vmatprep.subr.bf16.mxu1 %v4825_v51  ;;  %3744 = vmatprep.subr.bf16.mxu0 %v4827_v53  ;;  %v2753_v51 = vld [vmem:[#allocation8 + $0x30] sm:$0xff] }
 0x642   : > { %v2761_v53 = vld [vmem:[#allocation8 + $0x70] sm:$0xff] }
 0x643   : > { %v5659_v46 = vld [vmem:[#allocation10 + $0x90] ss:$8 sps:$4 sm:$0xff]  }
 0x644   : > { %3702 = vmatpush1.bf16.msra.mxu1 %v4824_v62  ;;  %3745 = vmatpush1.bf16.msra.mxu0 %v4826_v33  ;;  %v4829_v62 = vcombine.high %v2753_v51, %v2761_v53  ;;  %v4831_v33 = vcombine.high %v2754_v55, %v2762_v57 }
 0x645   : > { %3773 = vmatprep.subr.bf16.mxu1 %v4941_v63  ;;  %3816 = vmatprep.subr.bf16.mxu0 %v4943_v0  ;;  %v4828_v63 = vcombine.low %v2753_v51, %v2761_v53  ;;  %v4830_v0 = vcombine.low %v2754_v55, %v2762_v57 }
 0x647   : > { %3720 = vmatmul.mubr.bf16.vlgmr.msra.gmra.mxu1 %v6299_v59  ;;  %3763 = vmatmul.mubr.bf16.vlgmr.msra.gmra.mxu0 %v6299_v59 }
 0x648   : > { %3774 = vmatpush1.bf16.msra.mxu1 %v4940_v3  ;;  %3817 = vmatpush1.bf16.msra.mxu0 %v4942_v4  ;;  %v5601_v3 = vld [vmem:[#allocation10 + $0x154] ss:$8 sps:$4 sm:$0xff]   ;;  %v5599_v4 = vld [vmem:[#allocation10 + $0x150] ss:$8 sps:$4 sm:$0xff]  }
 0x649   : > { %3775 = vmatprep.subr.bf16.mxu1 %v4925_v5  ;;  %3818 = vmatprep.subr.bf16.mxu0 %v4927_v7  ;;  %v5604_v5 = vld [vmem:[#allocation10 + $0x144] ss:$8 sps:$4 sm:$0xff]   ;;  %v5602_v7 = vld [vmem:[#allocation10 + $0x140] ss:$8 sps:$4 sm:$0xff]  }
 0x64a   : > { %3805 = vmatprep.mubr.bf16.mxu1 %v5904_v41  ;;  %3848 = vmatprep.mubr.bf16.mxu0 %v5904_v41 }
 0x64c   : > { %3776 = vmatpush1.bf16.msra.mxu1 %v4924_v12  ;;  %3819 = vmatpush1.bf16.msra.mxu0 %v4926_v13  ;;  %v5605_v12 = vld [vmem:[#allocation10 + $0x130] ss:$8 sps:$4 sm:$0xff]   ;;  %v5610_v13 = vld [vmem:[#allocation10 + $0x124] ss:$8 sps:$4 sm:$0xff]  }
 0x64d   : > { %3777 = vmatprep.subr.bf16.mxu1 %v4909_v14  ;;  %3820 = vmatprep.subr.bf16.mxu0 %v4911_v15  ;;  %v5625_v14 = vld [vmem:[#allocation10 + $0x54] ss:$8 sps:$4 sm:$0xff]   ;;  %v5608_v15 = vld [vmem:[#allocation10 + $0x120] ss:$8 sps:$4 sm:$0xff]  }
 0x650   : > { %3778 = vmatpush1.bf16.msra.mxu1 %v4908_v23  ;;  %3821 = vmatpush1.bf16.msra.mxu0 %v4910_v20  ;;  %v5616_v23 = vld [vmem:[#allocation10 + $0x104] ss:$8 sps:$4 sm:$0xff]   ;;  %v5626_v20 = vld [vmem:[#allocation10 + $0x40] ss:$8 sps:$4 sm:$0xff]  }
 0x651   : > { %3779 = vmatprep.subr.bf16.mxu1 %v4893_v24  ;;  %3822 = vmatprep.subr.bf16.mxu0 %v4895_v25  ;;  %v5614_v24 = vld [vmem:[#allocation10 + $0x100] ss:$8 sps:$4 sm:$0xff]   ;;  %v5631_v25 = vld [vmem:[#allocation10 + $0x34] ss:$8 sps:$4 sm:$0xff]  }
 0x654   : > { %3780 = vmatpush1.bf16.msra.mxu1 %v4892_v30  ;;  %3823 = vmatpush1.bf16.msra.mxu0 %v4894_v22  ;;  %v5635_v30 = vld [vmem:[#allocation10 + $0x10] ss:$8 sps:$4 sm:$0xff]   ;;  %v5640_v22 = vld [vmem:[#allocation10 + $0x4] ss:$8 sps:$4 sm:$0xff]  }
 0x655   : > { %3781 = vmatprep.subr.bf16.mxu1 %v4877_v31  ;;  %3824 = vmatprep.subr.bf16.mxu0 %v4879_v32  ;;  %v5638_v31 = vld [vmem:[#allocation10] ss:$8 sps:$4 sm:$0xff]   ;;  %v5643_v32 = vld [vmem:[#allocation10 + $0xf4] ss:$8 sps:$4 sm:$0xff]  }
 0x658   : > { %3782 = vmatpush1.bf16.msra.mxu1 %v4876_v39  ;;  %3825 = vmatpush1.bf16.msra.mxu0 %v4878_v40  ;;  %v5652_v39 = vld [vmem:[#allocation10 + $0xc4] ss:$8 sps:$4 sm:$0xff]   ;;  %v5650_v40 = vld [vmem:[#allocation10 + $0xc0] ss:$8 sps:$4 sm:$0xff]  }
 0x659   : > { %3783 = vmatprep.subr.bf16.mxu1 %v4861_v42  ;;  %3826 = vmatprep.subr.bf16.mxu0 %v4863_v34  ;;  %v5655_v42 = vld [vmem:[#allocation10 + $0xb4] ss:$8 sps:$4 sm:$0xff]   ;;  %v5653_v34 = vld [vmem:[#allocation10 + $0xb0] ss:$8 sps:$4 sm:$0xff]  }
 0x65c   : > { %3784 = vmatpush1.bf16.msra.mxu1 %v4860_v47  ;;  %3827 = vmatpush1.bf16.msra.mxu0 %v4862_v48  ;;  %v5664_v47 = vld [vmem:[#allocation10 + $0x84] ss:$8 sps:$4 sm:$0xff]   ;;  %v5662_v48 = vld [vmem:[#allocation10 + $0x80] ss:$8 sps:$4 sm:$0xff]  }
 0x65d   : > { %3785 = vmatprep.subr.bf16.mxu1 %v4845_v49  ;;  %3828 = vmatprep.subr.bf16.mxu0 %v4847_v50  ;;  %v3868_v49 = vpop.permute.xlu0 %3867  ;;  %v3870_v50 = vpop.permute.xlu1 %3869 }
 0x660   : > { %3786 = vmatpush1.bf16.msra.mxu1 %v4844_v60  ;;  %3829 = vmatpush1.bf16.msra.mxu0 %v4846_v61 }
 0x661   : > { %3787 = vmatprep.subr.bf16.mxu1 %v4829_v62  ;;  %3830 = vmatprep.subr.bf16.mxu0 %v4831_v33  ;;  %v3872_v51 = vpop.permute.xlu0 %3871  ;;  %v3874_v53 = vpop.permute.xlu1 %3873 }
 0x664   : > { %3788 = vmatpush1.bf16.msra.mxu1 %v4828_v63  ;;  %3831 = vmatpush1.bf16.msra.mxu0 %v4830_v0 }
 0x665   : > { %4380 = vmatprep.subr.bf16.mxu0 %v5595_v1  ;;  %4337 = vmatprep.subr.bf16.mxu1 %v5619_v10  ;;  %v3892_v55 = vpop.permute.xlu0 %3891  ;;  %v3894_v57 = vpop.permute.xlu1 %3893 }
 0x667   : > { %3806 = vmatmul.mubr.bf16.vlgmr.msra.gmra.mxu1 %v6299_v59  ;;  %3849 = vmatmul.mubr.bf16.vlgmr.msra.gmra.mxu0 %v6299_v59 }
 0x668   : > { %4381 = vmatpush1.bf16.msra.mxu0 %v5593_v2  ;;  %4412 = vmatprep.mubr.bf16.mxu0 %v5904_v41  ;;  %v5620_v41 = vld [vmem:[#allocation10 + $0x60] ss:$8 sps:$4 sm:$0xff]  }
 0x669   : > { %4382 = vmatprep.subr.bf16.mxu0 %v5598_v18  ;;  %4338 = vmatpush1.bf16.msra.mxu1 %v5617_v9  ;;  %v3896_v60 = vpop.permute.xlu0 %3895  ;;  %v3898_v61 = vpop.permute.xlu1 %3897 }
 0x66a   : > { %4339 = vmatprep.subr.bf16.mxu1 %v5622_v11 }
 0x66c   : > { %4383 = vmatpush1.bf16.msra.mxu0 %v5596_v19 }
 0x66d   : > { %4384 = vmatprep.subr.bf16.mxu0 %v5601_v3  ;;  %4340 = vmatpush1.bf16.msra.mxu1 %v5620_v41  ;;  %v3916_v62 = vpop.permute.xlu0 %3915  ;;  %v3918_v33 = vpop.permute.xlu1 %3917 }
 0x66e   : > { %4341 = vmatprep.subr.bf16.mxu1 %v5625_v14 }
 0x670   : > { %4385 = vmatpush1.bf16.msra.mxu0 %v5599_v4 }
 0x671   : > { %4386 = vmatprep.subr.bf16.mxu0 %v5604_v5  ;;  %4342 = vmatpush1.bf16.msra.mxu1 %v5623_v17  ;;  %v6317_v63 = vpop.permute.xlu0 %3919  ;;  %v6319_v1 = vpop.permute.xlu1 %3921 }
 0x672   : > { %4343 = vmatprep.subr.bf16.mxu1 %v5628_v6 }
 0x674   : > { %4387 = vmatpush1.bf16.msra.mxu0 %v5602_v7 }
 0x675   : > { %4388 = vmatprep.subr.bf16.mxu0 %v5607_v8  ;;  %4344 = vmatpush1.bf16.msra.mxu1 %v5626_v20  ;;  %v6321_v19 = vpop.permute.xlu0 %3939  ;;  %v3942_v4 = vpop.permute.xlu1 %3941 }
 0x676   : > { %4345 = vmatprep.subr.bf16.mxu1 %v5631_v25 }
 0x678   : > { %4389 = vmatpush1.bf16.msra.mxu0 %v5605_v12 }
 0x679   : > { %4390 = vmatprep.subr.bf16.mxu0 %v5610_v13  ;;  %4346 = vmatpush1.bf16.msra.mxu1 %v5629_v26  ;;  %v6323_v8 = vpop.permute.xlu0 %3943  ;;  %v6325_v10 = vpop.permute.xlu1 %3945 }
 0x67a   : > { %4347 = vmatprep.subr.bf16.mxu1 %v5634_v27 }
 0x67c   : > { %4391 = vmatpush1.bf16.msra.mxu0 %v5608_v15 }
 0x67d   : > { %4392 = vmatprep.subr.bf16.mxu0 %v5613_v16  ;;  %4348 = vmatpush1.bf16.msra.mxu1 %v5632_v28  ;;  %v6327_v41 = vpop.permute.xlu0 %3963  ;;  %v6329_v15 = vpop.permute.xlu1 %3965 }
 0x67e   : > { %4349 = vmatprep.subr.bf16.mxu1 %v5637_v29  ;;  %v3881_v29 = vsel %vm1251_vm1, 0.0, %v3868_v49 }
 0x680   : > { %4393 = vmatpush1.bf16.msra.mxu0 %v5611_v21 }
 0x681   : > { %4394 = vmatprep.subr.bf16.mxu0 %v5616_v23  ;;  %4350 = vmatpush1.bf16.msra.mxu1 %v5635_v30  ;;  %v6331_v6 = vpop.permute.xlu0 %3967  ;;  %v6333_v23 = vpop.permute.xlu1 %3969  ;;  %v3875_v30 = vsel %vm1251_vm1, %v3868_v49, %v3870_v50  ;;  %v3900_v49 = vsel %vm1265_vm0, %v3896_v60, %v3898_v61 }
 0x682   : > { %4351 = vmatprep.subr.bf16.mxu1 %v5640_v22  ;;  %v3882_v22 = vsel %vm1251_vm1, 0.0, %v3872_v51 }
 0x684   : > { %4395 = vmatpush1.bf16.msra.mxu0 %v5614_v24 }
 0x685   : > { %4352 = vmatpush1.bf16.msra.mxu1 %v5638_v31  ;;  %v6335_v26 = vpop.permute.xlu0 %3987  ;;  %v6339_v28 = vpop.permute.xlu1 %3989  ;;  %v3876_v31 = vsel %vm1251_vm1, %v3872_v51, %v3874_v53 }
 0x686   : > { %4353 = vmatprep.subr.bf16.mxu1 %v5643_v32  ;;  %v3905_v32 = vsel %vm1265_vm0, 0.0, %v3892_v55 }
 0x687   : > { %4413 = vmatmul.mubr.bf16.vlgmr.msra.gmra.mxu0 %v6299_v59  ;;  %v5644_v59 = vld [vmem:[#allocation10 + $0xe0] ss:$8 sps:$4 sm:$0xff]  }
 0x689   : > { %4354 = vmatpush2.bf16.msra.mxu1 %v5641_v35  ;;  %v6355_v50 = vpop.permute.xlu1 %3993 }
 0x68a   : > { %4355 = vmatprep.subr.bf16.mxu1 %v5646_v36 }
 0x68d   : > { %4356 = vmatpush2.bf16.msra.mxu1 %v5644_v59 }
 0x68e   : > { %4357 = vmatprep.subr.bf16.mxu1 %v5649_v37 }
 0x691   : > { %4358 = vmatpush2.bf16.msra.mxu1 %v5647_v38 }
 0x692   : > { %4359 = vmatprep.subr.bf16.mxu1 %v5652_v39 }
 0x695   : > { %4360 = vmatpush2.bf16.msra.mxu1 %v5650_v40 }
 0x696   : > { %4361 = vmatprep.subr.bf16.mxu1 %v5655_v42  ;;  %v3899_v42 = vsel %vm1265_vm0, %v3892_v55, %v3894_v57  ;;  %v3929_v57 = vsel %vm1278_vm2, 0.0, %v3916_v62 }
 0x699   : > { %4362 = vmatpush2.bf16.msra.mxu1 %v5653_v34  ;;  %v3906_v34 = vsel %vm1265_vm0, 0.0, %v3896_v60  ;;  %v3953_v60 = vsel %vm1291_vm3, 0.0, %v6321_v19 }
 0x69a   : > { %4363 = vmatprep.subr.bf16.mxu1 %v5658_v43 }
 0x69d   : > { %4364 = vmatpush2.bf16.msra.mxu1 %v5656_v44  ;;  %v6351_v44 = vpop.permute.xlu0 %3991 }
 0x69e   : > { %4365 = vmatprep.subr.bf16.mxu1 %v5661_v45 }
 0x6a1   : > { %4366 = vmatpush2.bf16.msra.mxu1 %v5659_v46 }
 0x6a2   : > { %4367 = vmatprep.subr.bf16.mxu1 %v5664_v47 }
 0x6a5   : > { %4368 = vmatpush2.bf16.msra.mxu1 %v5662_v48 }
 0x6c7   : > { %v3549_v0 = vpop.f32.mrf.mxu1  ;;  %v3592_v2 = vpop.f32.mrf.mxu0 }
 0x6c8   : > { %v3859_v39 = vmul.f32 %v3549_v0, %v6180_v52  ;;  %v3883_v40 = vmul.f32 %v3881_v29, %v3592_v2  ;;  %v3923_v0 = vsel %vm1278_vm2, %v3916_v62, %v3918_v33  ;;  %v4012_v62 = vpop.permute.xlu0 %4011 }
 0x6c9   : > { %v3551_v18 = vpop.f32.mrf.mxu1  ;;  %v3594_v3 = vpop.f32.mrf.mxu0 }
 0x6ca   : > { %v3860_v36 = vmul.f32 %v3551_v18, %v6182_v54  ;;  %v3884_v59 = vmul.f32 %v3875_v30, %v3594_v3  ;;  %v3887_v55 = vadd.f32 %v3883_v40, %v3859_v39  ;;  %v3924_v30 = vsel %vm1278_vm2, %v6317_v63, %v6319_v1 }
 0x6cb   : > { %v3553_v5 = vpop.f32.mrf.mxu1  ;;  %v3596_v7 = vpop.f32.mrf.mxu0  ;;  %v3995_v40 = vsel %vm1317_vm5, %v6335_v26, %v6339_v28 }
 0x6cc   : > { %v3861_v37 = vmul.f32 %v3553_v5, %v6184_v56  ;;  %v3885_v38 = vmul.f32 %v3882_v22, %v3596_v7  ;;  %v3888_v52 = vadd.f32 %v3884_v59, %v3860_v36 }
 0x6cd   : > { %v3555_v9 = vpop.f32.mrf.mxu1  ;;  %v3598_v11 = vpop.f32.mrf.mxu0 }
 0x6ce   : > { %v3862_v45 = vmul.f32 %v3555_v9, %v6186_v58  ;;  %v3886_v46 = vmul.f32 %v3876_v31, %v3598_v11  ;;  %v3889_v51 = vadd.f32 %v3885_v38, %v3861_v37  ;;  %v3930_v58 = vsel %vm1278_vm2, 0.0, %v6317_v63 }
 0x6cf   : > { %v3947_v9 = vsel %vm1291_vm3, %v6321_v19, %v3942_v4  ;;  %v3954_v11 = vsel %vm1291_vm3, 0.0, %v6323_v8  ;;  %v4014_v4 = vpop.permute.xlu1 %4013  ;;  %v3971_v63 = vsel %vm1304_vm4, %v6327_v41, %v6329_v15  ;;  %v3972_v15 = vsel %vm1304_vm4, %v6331_v6, %v6333_v23 }
 0x6d0   : > { %v3890_v18 = vadd.f32 %v3886_v46, %v3862_v45 }
 0x6e7   : > { %v3635_v12 = vpop.f32.mrf.mxu1  ;;  %v3678_v13 = vpop.f32.mrf.mxu0 }
 0x6e8   : > { %v3907_v54 = vmul.f32 %v3905_v32, %v3635_v12  ;;  %v3931_v29 = vmul.f32 %v3929_v57, %v3678_v13 }
 0x6e9   : > { %v3637_v14 = vpop.f32.mrf.mxu1  ;;  %v3680_v16 = vpop.f32.mrf.mxu0 }
 0x6ea   : > { %v3908_v47 = vmul.f32 %v3899_v42, %v3637_v14  ;;  %v3911_v61 = vadd.f32 %v3907_v54, %v3887_v55  ;;  %v3932_v7 = vmul.f32 %v3923_v0, %v3680_v16  ;;  %v3948_v16 = vsel %vm1291_vm3, %v6323_v8, %v6325_v10 }
 0x6eb   : > { %v3639_v17 = vpop.f32.mrf.mxu1  ;;  %v3682_v21 = vpop.f32.mrf.mxu0  ;;  %v3978_v10 = vsel %vm1304_vm4, 0.0, %v6331_v6 }
 0x6ec   : > { %v3909_v48 = vmul.f32 %v3906_v34, %v3639_v17  ;;  %v3912_v3 = vadd.f32 %v3908_v47, %v3888_v52  ;;  %v3933_v33 = vmul.f32 %v3930_v58, %v3682_v21  ;;  %v3935_v21 = vadd.f32 %v3931_v29, %v3911_v61  ;;  %v4016_v34 = vpop.permute.xlu0 %4015 }
 0x6ed   : > { %v3641_v20 = vpop.f32.mrf.mxu1  ;;  %v3684_v24 = vpop.f32.mrf.mxu0  ;;  %v4026_v55 = vsel %vm1330_vm6, 0.0, %v4016_v34 }
 0x6ee   : > { %v3910_v53 = vmul.f32 %v3900_v49, %v3641_v20  ;;  %v3913_v5 = vadd.f32 %v3909_v48, %v3889_v51  ;;  %v3936_v31 = vadd.f32 %v3932_v7, %v3912_v3  ;;  %v3934_v36 = vmul.f32 %v3924_v30, %v3684_v24  ;;  %v4018_v51 = vpop.permute.xlu1 %4017 }
 0x6ef   : > { %v4001_v24 = vsel %vm1317_vm5, 0.0, %v6335_v26  ;;  %v4020_v61 = vsel %vm1330_vm6, %v4016_v34, %v4018_v51  ;;  %v4025_v7 = vsel %vm1330_vm6, 0.0, %v4012_v62  ;;  %v4087_v30 = vlaneseq }
 0x6f0   : > { %v3914_v14 = vadd.f32 %v3910_v53, %v3890_v18  ;;  %v3937_v32 = vadd.f32 %v3933_v33, %v3913_v5  ;;  %v4019_v5 = vsel %vm1330_vm6, %v4012_v62, %v4014_v4  ;;  %v4085_v62 = vld [vmem:[%s6462_s5] sm:$0x3] }
 0x6f2   : > { %v3938_v38 = vadd.f32 %v3934_v36, %v3914_v14 }
 0x707   : > { %v3721_v25 = vpop.f32.mrf.mxu1  ;;  %v6337_v27 = vpop.f32.mrf.mxu0 }
 0x708   : > { %v3955_v22 = vmul.f32 %v3953_v60, %v3721_v25 }
 0x709   : > { %v3723_v35 = vpop.f32.mrf.mxu1  ;;  %v3766_v43 = vpop.f32.mrf.mxu0 }
 0x70a   : > { %v3956_v17 = vmul.f32 %v3947_v9, %v3723_v35  ;;  %v3977_v35 = vsel %vm1304_vm4, 0.0, %v6327_v41  ;;  %v3959_v8 = vadd.f32 %v3955_v22, %v3935_v21  ;;  %v3980_v45 = vmul.f32 %v3971_v63, %v3766_v43  ;;  %v5673_v63 = vld [vmem:[%s6096_s18] sm:$0xff] }
 0x70b   : > { %v3725_v56 = vpop.f32.mrf.mxu1  ;;  %v3768_v2 = vpop.f32.mrf.mxu0  ;;  %v3979_v41 = vmul.f32 %v3977_v35, %v6337_v27  ;;  %v3996_v27 = vsel %vm1317_vm5, %v6351_v44, %v6355_v50  ;;  %v4088_v22 = vshrl.u32 %v4087_v30, 7 }
 0x70c   : > { %v3957_v20 = vmul.f32 %v3954_v11, %v3725_v56  ;;  %v3960_v39 = vadd.f32 %v3956_v17, %v3936_v31  ;;  %v3981_v46 = vmul.f32 %v3978_v10, %v3768_v2  ;;  %v4002_v56 = vsel %vm1317_vm5, 0.0, %v6351_v44 }
 0x70d   : > { %v3727_v12 = vpop.f32.mrf.mxu1  ;;  %v3770_v19 = vpop.f32.mrf.mxu0  ;;  %v3983_v57 = vadd.f32 %v3979_v41, %v3959_v8  ;;  %v5676_v41 = vld [vmem:[%s6096_s18 + $0x18] sm:$0xff] }
 0x70e   : > { %v3958_v59 = vmul.f32 %v3948_v16, %v3727_v12  ;;  %v3961_v1 = vadd.f32 %v3957_v20, %v3937_v32  ;;  %v3984_v26 = vadd.f32 %v3980_v45, %v3960_v39  ;;  %v3982_v53 = vmul.f32 %v3972_v15, %v3770_v19 }
 0x70f   : > { %v4089_v16 = vsub.s32 0, %v4088_v22  ;;  %v4093_v19 = vsub.s32 1, %v4088_v22 }
 0x710   : > { %v3962_v47 = vadd.f32 %v3958_v59, %v3938_v38  ;;  %v3985_v28 = vadd.f32 %v3981_v46, %v3961_v1  ;;  %v5675_v46 = vld [vmem:[%s6096_s18 + $0x10] sm:$0xff] }
 0x711   : > { %v4090_v31 = vrot.slane %v4085_v62, %v4089_v16  ;;  %v4094_v32 = vrot.slane %v4085_v62, %v4093_v19 }
 0x712   : > { %v3986_v23 = vadd.f32 %v3982_v53, %v3962_v47 }
 0x727   : > { %v3807_v13 = vpop.f32.mrf.mxu1  ;;  %v3850_v37 = vpop.f32.mrf.mxu0 }
 0x728   : > { %v4003_v54 = vmul.f32 %v4001_v24, %v3807_v13  ;;  %v4027_v33 = vmul.f32 %v4025_v7, %v3850_v37 }
 0x729   : > { %v3809_v25 = vpop.f32.mrf.mxu1  ;;  %v3852_v42 = vpop.f32.mrf.mxu0 }
 0x72a   : > { %v4004_v48 = vmul.f32 %v3995_v40, %v3809_v25  ;;  %v4007_v3 = vadd.f32 %v4003_v54, %v3983_v57  ;;  %v4028_v9 = vmul.f32 %v4019_v5, %v3852_v42  ;;  %v5674_v25 = vld [vmem:[%s6096_s18 + $0x8] sm:$0xff] }
 0x72b   : > { %v3811_v49 = vpop.f32.mrf.mxu1  ;;  %v3854_v52 = vpop.f32.mrf.mxu0 }
 0x72c   : > { %v4005_v43 = vmul.f32 %v4002_v56, %v3811_v49  ;;  %v4008_v58 = vadd.f32 %v4004_v48, %v3984_v26  ;;  %v4029_v60 = vmul.f32 %v4026_v55, %v3854_v52  ;;  %v4031_v50 = vadd.f32 %v4027_v33, %v4007_v3 }
 0x72d   : > { %v3813_v0 = vpop.f32.mrf.mxu1  ;;  %v3856_v6 = vpop.f32.mrf.mxu0 }
 0x72e   : > { %v4009_v2 = vadd.f32 %v4005_v43, %v3985_v28  ;;  %v4006_v18 = vmul.f32 %v3996_v27, %v3813_v0  ;;  %v4030_v12 = vmul.f32 %v4020_v61, %v3856_v6  ;;  %v4032_v17 = vadd.f32 %v4028_v9, %v4008_v58 }
 0x730   : > { %v4010_v11 = vadd.f32 %v4006_v18, %v3986_v23  ;;  %v4033_v14 = vadd.f32 %v4029_v60, %v4009_v2 }
 0x732   : > { %v4034_v44 = vadd.f32 %v4030_v12, %v4010_v11  ;;  %v4035_v29 = vpack.c.bf16 %v4033_v14, %v4031_v50 }
 0x734   : > { %v4036_v20 = vpack.c.bf16 %v4034_v44, %v4032_v17 }
 0x736   : > { %4369 = vmatprep.mubr.bf16.mxu1 %v4036_v20 }
 0x737   : > { %4370 = vmatmul.mubr.bf16.vlgmr.msra.gmra.mxu1 %v4035_v29 }
 0x747   : > { %v4414_v4 = vpop.f32.mrf.mxu0 }
 0x749   : > { %v4416_v36 = vpop.f32.mrf.mxu0 }
 0x74b   : > { %v4418_v38 = vpop.f32.mrf.mxu0 }
 0x74d   : > { %v4420_v45 = vpop.f32.mrf.mxu0 }
 0x7f7   : > { %v4371_v59 = vpop.f32.mrf.mxu1 }
 0x7f8   : > { %v4372_v21 = vadd.f32 %v4371_v59, %v4090_v31 }
 0x7f9   : > { %v4373_v35 = vpop.f32.mrf.mxu1 }
 0x7fa   : > { %v4415_v13 = vadd.f32 %v4414_v4, %v4372_v21  ;;  %v4374_v37 = vadd.f32 %v4373_v35, %v4094_v32 }
 0x7fb   : > { %v4375_v39 = vpop.f32.mrf.mxu1 }
 0x7fc   : > { %v4423_v1 = vadd.f32 %v5673_v63, %v4415_v13  ;;  %v4417_v8 = vadd.f32 %v4416_v36, %v4374_v37  ;;  %v4376_v10 = vadd.f32 %v4375_v39, %v4090_v31 }
 0x7fd   : > { %v4377_v24 = vpop.f32.mrf.mxu1 }
 0x7fe   : > { %4427 = vst [vmem:[%s355_s14] sm:$0xff] %v4423_v1  ;;  %v4424_v40 = vadd.f32 %v5674_v25, %v4417_v8  ;;  %v4419_v42 = vadd.f32 %v4418_v38, %v4376_v10  ;;  %v4378_v34 = vadd.f32 %v4377_v24, %v4094_v32 }
 0x800   : > { %4428 = vst [vmem:[%s355_s14 + $0x8] sm:$0xff] %v4424_v40  ;;  %v4425_v47 = vadd.f32 %v5675_v46, %v4419_v42  ;;  %v4421_v48 = vadd.f32 %v4420_v45, %v4378_v34 }
 0x802   : > { %4429 = vst [vmem:[%s355_s14 + $0x10] sm:$0xff] %v4425_v47  ;;  %v4426_v15 = vadd.f32 %v5676_v41, %v4421_v48 }
 0x804   : > { %4430 = vst [vmem:[%s355_s14 + $0x18] sm:$0xff] %v4426_v15 }
 0x805   : > { %5822 = shalt.err (!%p5819_p3)
}
 0x806   : > { %s5823_s18 = scalar_lea.hbm %s6413_s22, 512  ;;  %s5827_s14 = scalar_lea.hbm %s6464_s7, 1024 }
 0x807   : > { %p5824_p2 = scmp.ne.s32.totalorder %s6413_s22, %s5823_s18  ;;  %p5828_p10 = scmp.lt.s32.totalorder %s6413_s22, %s6464_s7 }
 0x808   : > { %p5829_p11 = scmp.lt.s32.totalorder %s5827_s14, %s5823_s18 }
 0x809   : > { %p5825_p4 = pnand %p5824_p2, %p6484_p7 }
 0x80a   : > { %p5830_p6 = por %p5829_p11, %p5828_p10 }
 0x80b   : > { %p5826_p8 = pneg %p5825_p4 }
 0x80d   : > { %p5831_p12 = pnand %p5830_p6, %p5826_p8 }
 0x80f   : > { %5834 = shalt.err (!%p5831_p12)
}
 0x810   : > { %s5906_s21 = smov 256  }
 0x811   : > { %5218 = dma.vmem_to_hbm [thread:$0]  (%p6484_p7), %s6407_s30, 512, %s6413_s22, %s4432_s23, %s5906_s21, %s5906_s21, %s5898_s9  }
 0x812 PF: > { %s4461_s28 = sand.u32 1, %s5869_s24   ;;  %p6485_p9 = scmp.ne.s32.totalorder %s6471_s8, 0 }
 0x813   : > { %p6486_p13 = scmp.ge.s32.totalorder %s5881_s27, 2  ;;  %s4462_s12 = scalar_lea.sflag [#allocation4], %s4461_s28 }
 0x815   : > { %p5238_p0 = pnand %p6486_p13, %p6485_p9 }
 0x817   : > { %p5239_p5 = pneg %p5238_p0 }
 0x819   : > { %5864 = dma.done.wait (%p5239_p5), %s4462_s12, 512  }
 0x81a   : > { %5866 = vsyncadd (%p5239_p5), %s4462_s12, 4294966784  ;;  %p22_p1 = scmp.ge.s32.totalorder %s6035_s29, 4   ;;  %s6487_s24 = smov %s5873_s25 }
 0x81b   : > { %s6488_s25 = smov %s5877_s26  ;;  %s6489_s26 = smov %s6045_s13 }
 0x81c   : > { %s6490_s27 = smov %s6035_s29  ;;  %24 = sbr.rel (!%p22_p1) target bundleno = 9 (0x9), region = 109 }
 0x821   :  { %4467 = vsyncpa [#allocation3], 1 }
 0x822   :  { %4469 = vsyncpa [#allocation3 + $0x1], 1 }
 0x823   :  { %4470 = vsyncpa [#allocation6], 1 }
 0x824   :  { %4471 = vsyncpa [#allocation9], 1 }
 0x825   :  { %4472 = vsyncpa [#allocation4], 1 }
 0x826   :  { %4474 = vsyncpa [#allocation4 + $0x1], 1 }

</bundles_post_ra>
